<compile_context>
chip_gen: v7x
topology: tpu7x:2x2x1
jax: 0.10.0
libtpu: 0.0.40
codegen_flags: <defaults>
</compile_context>

<pallas_src>
import jax
import jax.numpy as jnp
from jax.experimental import pallas as pl
from jax.experimental.pallas import tpu as pltpu


def headnet_kernel(x_ref, w1_ref, b1_ref, w2_ref, b2_ref, o_ref):
    # fc1: (B, D) bf16 @ (D, H) bf16 -> f32 accum, + bias, ReLU.
    h = jnp.dot(x_ref[...], w1_ref[...], preferred_element_type=jnp.float32)
    h = jnp.maximum(h + b1_ref[...], 0.0)
    # fc2: (B, H) f32 @ (H, A) f32 -> f32, + bias.  Final result written directly.
    o_ref[...] = (
        jnp.dot(h, w2_ref[...], preferred_element_type=jnp.float32) + b2_ref[...]
    )


def prepare_headnet_params(w1, b1, w2, b2):
    """One-time weight prep: store the large fc1 weight in bf16, tiny params in f32.

    Layout: weights are (in, out), so the kernel computes y = x @ W + b
    (equivalent to PyTorch's x @ W.T + b with W stored (out, in)).
    """
    return (
        w1.astype(jnp.bfloat16),
        b1.astype(jnp.float32).reshape(1, -1),
        w2.astype(jnp.float32),
        b2.astype(jnp.float32).reshape(1, -1),
    )


def headnet_forward(x, w1_bf16, b1, w2, b2):
    B, D = x.shape
    H = w1_bf16.shape[1]
    A = w2.shape[1]
    # Hard precondition: weights must be pre-converted (prepare_headnet_params),
    # never cast per call -- the astype would cost 3x the kernel's HBM bytes.
    assert w1_bf16.dtype == jnp.bfloat16, "run prepare_headnet_params once"
    assert w1_bf16.shape == (D, H) and b1.shape == (1, H)
    assert w2.shape == (H, A) and b2.shape == (1, A)

    x_bf = x.astype(jnp.bfloat16)  # tiny (B, D) activation cast

    return pl.pallas_call(
        headnet_kernel,
        out_shape=jax.ShapeDtypeStruct((B, A), jnp.float32),
        grid=(1,),
        in_specs=[
            pl.BlockSpec((B, D), lambda i: (0, 0)),   # x
            pl.BlockSpec((D, H), lambda i: (0, 0)),   # w1 (bf16, 1.6 MB)
            pl.BlockSpec((1, H), lambda i: (0, 0)),   # b1
            pl.BlockSpec((H, A), lambda i: (0, 0)),   # w2 (f32, 32 KB)
            pl.BlockSpec((1, A), lambda i: (0, 0)),   # b2
        ],
        out_specs=pl.BlockSpec((B, A), lambda i: (0, 0)),
        compiler_params=pltpu.CompilerParams(
            dimension_semantics=("arbitrary",),
        ),
    )(x_bf, w1_bf16, b1, w2, b2)


def headnet_reference(x, w1, b1, w2, b2):
    h = jnp.maximum(x @ w1 + b1, 0.0)
    return h @ w2 + b2


if __name__ == "__main__":
    # Module hyperparameters (from HeadNet.__init__ defaults).
    n_actions = 4
    reshape_size = 10 * 10 * 4      # 400
    split_size = 1024 * 2           # 2048
    batch = 2

    key = jax.random.PRNGKey(0)
    k_x, k_w1, k_b1, k_w2, k_b2 = jax.random.split(key, 5)

    # Deterministic parameter init mimicking torch.nn.Linear defaults:
    # U(-1/sqrt(fan_in), 1/sqrt(fan_in)).  (weights_init is a no-op for Linear.)
    bound1 = 1.0 / jnp.sqrt(reshape_size)
    bound2 = 1.0 / jnp.sqrt(split_size)

    x = jax.random.normal(k_x, (batch, reshape_size), dtype=jnp.float32)
    w1 = jax.random.uniform(k_w1, (reshape_size, split_size),
                            minval=-bound1, maxval=bound1, dtype=jnp.float32)
    b1 = jax.random.uniform(k_b1, (1, split_size),
                            minval=-bound1, maxval=bound1, dtype=jnp.float32)
    w2 = jax.random.uniform(k_w2, (split_size, n_actions),
                            minval=-bound2, maxval=bound2, dtype=jnp.float32)
    b2 = jax.random.uniform(k_b2, (1, n_actions),
                            minval=-bound2, maxval=bound2, dtype=jnp.float32)

    # One-time weight prep (bf16 storage for w1 halves the per-call HBM stream).
    w1_p, b1_p, w2_p, b2_p = prepare_headnet_params(w1, b1, w2, b2)

    out = headnet_forward(x, w1_p, b1_p, w2_p, b2_p)
    out = jax.block_until_ready(out)

    # Reference 1: same bf16-rounded x/w1, f32 math (tight check of the kernel).
    ref_bf = headnet_reference(x.astype(jnp.bfloat16).astype(jnp.float32),
                               w1_p.astype(jnp.float32), b1_p, w2_p, b2_p)
    # Reference 2: full f32 module semantics (loose check, bf16 streaming noise).
    ref_f32 = headnet_reference(x, w1, b1, w2, b2)

    assert out.shape == (batch, n_actions)
    assert jnp.allclose(out, ref_bf, atol=1e-3, rtol=1e-3), \
        "mismatch vs bf16-rounded reference"
    assert jnp.allclose(out, ref_f32, atol=5e-2, rtol=5e-2), \
        "mismatch vs f32 reference"

    print("KERNEL_OK")
</pallas_src>

<mosaic_0001>
module attributes {stable_mosaic.version = 11 : i64} {
  func.func @headnet_kernel(%arg0: i32, %arg1: memref<2x400xbf16, #tpu.memory_space<vmem>>, %arg2: memref<400x2048xbf16, #tpu.memory_space<vmem>>, %arg3: memref<1x2048xf32, #tpu.memory_space<vmem>>, %arg4: memref<2048x4xf32, #tpu.memory_space<vmem>>, %arg5: memref<1x4xf32, #tpu.memory_space<vmem>>, %arg6: memref<2x4xf32, #tpu.memory_space<vmem>>) attributes {dimension_semantics = [#tpu.dimension_semantics<arbitrary>], iteration_bounds = array<i64: 1>, scalar_prefetch = 0 : i64, scratch_operands = 0 : i64, tpu.core_type = #tpu.core_type<tc>, window_params = [{pipeline_mode = #tpu.pipeline_mode<synchronous>, transform_indices = @transform_0, window_bounds = array<i64: 2, 400>}, {pipeline_mode = #tpu.pipeline_mode<synchronous>, transform_indices = @transform_1, window_bounds = array<i64: 400, 2048>}, {pipeline_mode = #tpu.pipeline_mode<synchronous>, transform_indices = @transform_2, window_bounds = array<i64: 1, 2048>}, {pipeline_mode = #tpu.pipeline_mode<synchronous>, transform_indices = @transform_3, window_bounds = array<i64: 2048, 4>}, {pipeline_mode = #tpu.pipeline_mode<synchronous>, transform_indices = @transform_4, window_bounds = array<i64: 1, 4>}, {pipeline_mode = #tpu.pipeline_mode<synchronous>, transform_indices = @transform_5, window_bounds = array<i64: 2, 4>}]} {
    %c0 = arith.constant 0 : index
    %c0_0 = arith.constant 0 : index
    %0 = vector.load %arg1[%c0, %c0_0] : memref<2x400xbf16, #tpu.memory_space<vmem>>, vector<2x400xbf16>
    %c0_1 = arith.constant 0 : index
    %c0_2 = arith.constant 0 : index
    %1 = vector.load %arg2[%c0_1, %c0_2] : memref<400x2048xbf16, #tpu.memory_space<vmem>>, vector<400x2048xbf16>
    %cst = arith.constant dense<0.000000e+00> : vector<2x2048xf32>
    %2 = tpu.matmul %0, %1, %cst {dimension_numbers = #tpu.dot_dimension_numbers<[1], [0], [0], [1], [0, 0, 1, 1], [], []>} : vector<2x400xbf16>, vector<400x2048xbf16>, vector<2x2048xf32> -> vector<2x2048xf32>
    %c0_3 = arith.constant 0 : index
    %c0_4 = arith.constant 0 : index
    %3 = vector.load %arg3[%c0_3, %c0_4] : memref<1x2048xf32, #tpu.memory_space<vmem>>, vector<1x2048xf32>
    %4 = vector.broadcast %3 : vector<1x2048xf32> to vector<2x2048xf32>
    %5 = arith.addf %2, %4 : vector<2x2048xf32>
    %cst_5 = arith.constant 0.000000e+00 : f32
    %6 = vector.broadcast %cst_5 : f32 to vector<2x2048xf32>
    %7 = arith.maximumf %5, %6 : vector<2x2048xf32>
    %c0_6 = arith.constant 0 : index
    %c0_7 = arith.constant 0 : index
    %8 = vector.load %arg4[%c0_6, %c0_7] : memref<2048x4xf32, #tpu.memory_space<vmem>>, vector<2048x4xf32>
    %cst_8 = arith.constant dense<0.000000e+00> : vector<2x4xf32>
    %9 = tpu.matmul %7, %8, %cst_8 {dimension_numbers = #tpu.dot_dimension_numbers<[1], [0], [0], [1], [0, 0, 1, 1], [], []>} : vector<2x2048xf32>, vector<2048x4xf32>, vector<2x4xf32> -> vector<2x4xf32>
    %c0_9 = arith.constant 0 : index
    %c0_10 = arith.constant 0 : index
    %10 = vector.load %arg5[%c0_9, %c0_10] : memref<1x4xf32, #tpu.memory_space<vmem>>, vector<1x4xf32>
    %11 = vector.broadcast %10 : vector<1x4xf32> to vector<2x4xf32>
    %12 = arith.addf %9, %11 : vector<2x4xf32>
    %c0_11 = arith.constant 0 : index
    %c0_12 = arith.constant 0 : index
    %13 = vector.load %arg6[%c0_11, %c0_12] : memref<2x4xf32, #tpu.memory_space<vmem>>, vector<2x4xf32>
    tpu.vector_store %arg6[%c0_11, %c0_12], %12 {strides = array<i32>} : memref<2x4xf32, #tpu.memory_space<vmem>>, vector<2x4xf32>,
    return
  }
  func.func @transform_0(%arg0: i32) -> (i32, i32) {
    %c0_i32 = arith.constant 0 : i32
    %c0_i32_0 = arith.constant 0 : i32
    %c0_i32_1 = arith.constant 0 : i32
    return %c0_i32, %c0_i32_0 : i32, i32
  }
  func.func @transform_1(%arg0: i32) -> (i32, i32) {
    %c0_i32 = arith.constant 0 : i32
    %c0_i32_0 = arith.constant 0 : i32
    %c0_i32_1 = arith.constant 0 : i32
    return %c0_i32, %c0_i32_0 : i32, i32
  }
  func.func @transform_2(%arg0: i32) -> (i32, i32) {
    %c0_i32 = arith.constant 0 : i32
    %c0_i32_0 = arith.constant 0 : i32
    %c0_i32_1 = arith.constant 0 : i32
    return %c0_i32, %c0_i32_0 : i32, i32
  }
  func.func @transform_3(%arg0: i32) -> (i32, i32) {
    %c0_i32 = arith.constant 0 : i32
    %c0_i32_0 = arith.constant 0 : i32
    %c0_i32_1 = arith.constant 0 : i32
    return %c0_i32, %c0_i32_0 : i32, i32
  }
  func.func @transform_4(%arg0: i32) -> (i32, i32) {
    %c0_i32 = arith.constant 0 : i32
    %c0_i32_0 = arith.constant 0 : i32
    %c0_i32_1 = arith.constant 0 : i32
    return %c0_i32, %c0_i32_0 : i32, i32
  }
  func.func @transform_5(%arg0: i32) -> (i32, i32) {
    %c0_i32 = arith.constant 0 : i32
    %c0_i32_0 = arith.constant 0 : i32
    %c0_i32_1 = arith.constant 0 : i32
    return %c0_i32, %c0_i32_0 : i32, i32
  }
}

</mosaic_0001>

<bundles_post_ra>
// kernel: tpu_custom_call.1
= control target key start
LH: loop header
LB: loop body
LE: loop exit
PB: predicated region body
PF: predicated region fallthrough
CT: control target
= control target key end

     0   :  { %10 = vsyncpa [#allocation3], 0  ;;  %s6236_s0 = inlined_call_operand.hbm [shape: bf16[2,400], index: 0, kind: input, shape index: {}]   ;;  %s6237_s1 = inlined_call_operand.hbm [shape: bf16[400,2048], index: 1, kind: input, shape index: {}]   ;;  %s6238_s2 = inlined_call_operand.hbm [shape: f32[1,2048], index: 2, kind: input, shape index: {}]   ;;  %s6239_s3 = inlined_call_operand.vmem [shape: f32[2048,4], index: 3, kind: input, shape index: {}]   ;;  %s6240_s4 = inlined_call_operand.hbm [shape: f32[1,4], index: 4, kind: input, shape index: {}]   ;;  %s6241_s5 = inlined_call_operand.hbm [shape: f32[2,4], index: 5, kind: output, shape index: {}]  }
   0x1   :  { %11 = vsyncpa [#allocation6], 0 }
   0x2   :  { %12 = vsyncpa [#allocation9], 0 }
   0x3   :  { %13 = vsyncpa [#allocation4], 0  ;;  %s5222_s18 = smov [#allocation5]   ;;  %s5104_s22 = scalar_lea.hbm %s6237_s1, 51200 }
   0x4   :  { %s29_s19 = sshll.u32 %s5222_s18, 4  ;;  %p5105_p0 = scmp.ne.s32.totalorder %s6237_s1, %s5104_s22  ;;  %s30_s19 = int_to_ptr.vmem [resolvable:$true] %s29_s19 }
   0x5   :  { %p5108_p1 = scmp.lt.u32.totalorder %s5104_s22, %s6237_s1 }
   0x7   :  { %p5110_p2 = pnand %p5108_p1, %p5105_p0 }
   0x9   :  { %5113 = shalt.err (!%p5110_p2)
}
   0xa   :  { %s5114_s27 = scalar_lea.vmem %s30_s19, 51200  ;;  %p5119_p4 = scmp.lt.s32.totalorder %s30_s19, %s30_s19 }
   0xb   :  { %p5115_p3 = scmp.ne.s32.totalorder %s30_s19, %s5114_s27  ;;  %p5120_p5 = scmp.lt.s32.totalorder %s5114_s27, %s5114_s27 }
   0xd   :  { %p5121_p6 = por %p5120_p5, %p5119_p4 }
   0xf   :  { %p5122_p7 = pnand %p5121_p6, %p5115_p3 }
  0x11   :  { %5125 = shalt.err (!%p5122_p7)
}
  0x12   :  { %s5223_s28 = smov 1024   ;;  %s5224_s29 = smov 64  }
  0x13   :  { %35 = dma.hbm_to_vmem [thread:$0]  %s6237_s1, 51200, %s30_s19, [#allocation6], %s5223_s28, %s5223_s28, %s5224_s29  }
  0x14   :  { %s5225_s7 = smov [#allocation2]   ;;  %s5226_s9 = smov [#allocation7]  }
  0x15   :  { %s20_s8 = sshll.u32 %s5225_s7, 4  ;;  %s42_s10 = sshll.u32 %s5226_s9, 4  ;;  %s21_s8 = int_to_ptr.vmem [resolvable:$true] %s20_s8  ;;  %s43_s10 = int_to_ptr.vmem [resolvable:$true] %s42_s10 }
  0x16   :  { %s5126_s13 = scalar_lea.hbm %s6236_s0, 64 }
  0x17   :  { %p5127_p8 = scmp.ne.s32.totalorder %s6236_s0, %s5126_s13  ;;  %p5130_p9 = scmp.lt.u32.totalorder %s5126_s13, %s6236_s0 }
  0x19   :  { %p5132_p10 = pnand %p5130_p9, %p5127_p8 }
  0x1b   :  { %5135 = shalt.err (!%p5132_p10)
}
  0x1c   :  { %s5136_s1 = scalar_lea.vmem %s21_s8, 64  ;;  %p5141_p12 = scmp.lt.s32.totalorder %s21_s8, %s21_s8 }
  0x1d   :  { %p5137_p11 = scmp.ne.s32.totalorder %s21_s8, %s5136_s1  ;;  %p5142_p13 = scmp.lt.s32.totalorder %s5136_s1, %s5136_s1 }
  0x1f   :  { %p5143_p0 = por %p5142_p13, %p5141_p12 }
  0x21   :  { %p5144_p1 = pnand %p5143_p0, %p5137_p11 }
  0x23   :  { %5147 = shalt.err (!%p5144_p1)
}
  0x24   :  { %23 = dma.hbm_to_vmem [thread:$0]  %s6236_s0, 64, %s21_s8, [#allocation3]  }
  0x25   :  { %s5148_s22 = scalar_lea.hbm %s6238_s2, 256 }
  0x26   :  { %p5149_p2 = scmp.ne.s32.totalorder %s6238_s2, %s5148_s22  ;;  %p5152_p3 = scmp.lt.u32.totalorder %s5148_s22, %s6238_s2 }
  0x28   :  { %p5154_p4 = pnand %p5152_p3, %p5149_p2 }
  0x2a   :  { %5157 = shalt.err (!%p5154_p4)
}
  0x2b   :  { %s5158_s27 = scalar_lea.vmem %s43_s10, 256  ;;  %p5163_p6 = scmp.lt.s32.totalorder %s43_s10, %s43_s10 }
  0x2c   :  { %p5159_p5 = scmp.ne.s32.totalorder %s43_s10, %s5158_s27  ;;  %p5164_p7 = scmp.lt.s32.totalorder %s5158_s27, %s5158_s27 }
  0x2e   :  { %p5165_p8 = por %p5164_p7, %p5163_p6 }
  0x30   :  { %p5166_p9 = pnand %p5165_p8, %p5159_p5 }
  0x32   :  { %5169 = shalt.err (!%p5166_p9)
}
  0x33   :  { %45 = dma.hbm_to_vmem [thread:$0]  %s6238_s2, 256, %s43_s10, [#allocation6]  }
  0x34   :  { %s5227_s29 = smov [#allocation8]   ;;  %s5170_s8 = scalar_lea.hbm %s6240_s4, 16 }
  0x35   :  { %s54_s30 = sshll.u32 %s5227_s29, 4  ;;  %p5171_p10 = scmp.ne.s32.totalorder %s6240_s4, %s5170_s8  ;;  %s55_s30 = int_to_ptr.vmem [resolvable:$true] %s54_s30 }
  0x36   :  { %p5174_p11 = scmp.lt.u32.totalorder %s5170_s8, %s6240_s4 }
  0x38   :  { %p5176_p12 = pnand %p5174_p11, %p5171_p10 }
  0x3a   :  { %5179 = shalt.err (!%p5176_p12)
}
  0x3b   :  { %s5180_s14 = scalar_lea.vmem %s55_s30, 16  ;;  %s5184_s2 = scalar_lea.vmem %s55_s30, 32 }
  0x3c   :  { %p5181_p13 = scmp.ne.s32.totalorder %s55_s30, %s5180_s14  ;;  %p5185_p0 = scmp.lt.s32.totalorder %s55_s30, %s55_s30 }
  0x3d   :  { %p5186_p1 = scmp.lt.s32.totalorder %s5184_s2, %s5180_s14 }
  0x3f   :  { %p5187_p2 = por %p5186_p1, %p5185_p0 }
  0x41   :  { %p5188_p3 = pnand %p5187_p2, %p5181_p13 }
  0x43   :  { %5191 = shalt.err (!%p5188_p3)
}
  0x44   :  { %57 = dma.hbm_to_vmem [thread:$0]  %s6240_s4, 16, %s55_s30, [#allocation9]  }
  0x45   :  { %5214 = dma.done.wait [#allocation3], 64  }
  0x46   :  { %5215 = vsyncadd [#allocation3], 4294967232 }
  0x47   :  { %5216 = dma.done.wait [#allocation6], 51456  }
  0x48   :  { %5217 = vsyncadd [#allocation6], 4294915840 }
  0x49   :  { %5218 = dma.done.wait [#allocation9], 16  }
  0x4a   :  { %5219 = vsyncadd [#allocation9], 4294967280  ;;  %v72_v0 = vld [vmem:[#allocation5] sm:$0xff]  ;;  %v73_v2 = vld [vmem:[#allocation5 + $0x8] sm:$0xff]  ;;  %v476_v35 = vlaneseq  ;;  %v5228_v36 = vmov 1966171168  }
  0x4b   :  { %v80_v1 = vld [vmem:[#allocation5 + $0x40] sm:$0xff]  ;;  %v81_v4 = vld [vmem:[#allocation5 + $0x48] sm:$0xff]  ;;  %v566_v37 = vunpack.c.l.s4 %v5228_v36  ;;  %v5313_v59 = vld.sshfl [vmem:[#allocation2] sm:$0x33 pattern:$0x75316420] }
  0x4c   :  { %v4104_v3 = vcombine.high %v72_v0, %v80_v1  ;;  %v4103_v5 = vcombine.low %v72_v0, %v80_v1  ;;  %v88_v6 = vld [vmem:[#allocation5 + $0x80] sm:$0xff]  ;;  %v4106_v8 = vcombine.high %v73_v2, %v81_v4  ;;  %v4105_v9 = vcombine.low %v73_v2, %v81_v4  ;;  %v89_v11 = vld [vmem:[#allocation5 + $0x88] sm:$0xff] }
  0x4d   :  { %v96_v7 = vld [vmem:[#allocation5 + $0xc0] sm:$0xff]  ;;  %v97_v12 = vld [vmem:[#allocation5 + $0xc8] sm:$0xff]  ;;  %v5308_v46 = vshrl.u32 %v476_v35, 7  ;;  %v567_v47 = vunpack.c.0.s8 %v566_v37  ;;  %v564_v63 = vcombine.high %v5313_v59, %v5313_v59  ;;  %vm2584_vm0 = vcmask 130048  }
  0x4e   :  { %v4120_v10 = vcombine.high %v88_v6, %v96_v7  ;;  %v104_v13 = vld [vmem:[#allocation5 + $0x100] sm:$0xff]  ;;  %2588 = vmatprep.subr.bf16.mxu0 %v4104_v3  ;;  %v4122_v14 = vcombine.high %v89_v11, %v97_v12  ;;  %v105_v16 = vld [vmem:[#allocation5 + $0x108] sm:$0xff]  ;;  %2670 = vmatprep.subr.bf16.mxu1 %v4106_v8  ;;  %v4119_v18 = vcombine.low %v88_v6, %v96_v7  ;;  %vm4083_vm1 = vcmask 25600  }
  0x4f   :  { %v112_v15 = vld [vmem:[#allocation5 + $0x140] sm:$0xff]  ;;  %v113_v17 = vld [vmem:[#allocation5 + $0x148] sm:$0xff]  ;;  %2589 = vmatpush1.bf16.msra.mxu0 %v4103_v5  ;;  %2671 = vmatpush1.bf16.msra.mxu1 %v4105_v9  ;;  %v4121_v19 = vcombine.low %v89_v11, %v97_v12  ;;  %v5311_v56 = vsub.s32 %v567_v47, %v5308_v46 }
  0x50   :  { %2590 = vmatprep.subr.bf16.mxu0 %v4120_v10  ;;  %v4136_v20 = vcombine.high %v104_v13, %v112_v15  ;;  %2672 = vmatprep.subr.bf16.mxu1 %v4122_v14  ;;  %v4138_v21 = vcombine.high %v105_v16, %v113_v17  ;;  %v120_v22 = vld [vmem:[#allocation5 + $0x180] sm:$0xff]  ;;  %v121_v24 = vld [vmem:[#allocation5 + $0x188] sm:$0xff]  ;;  %v4135_v26 = vcombine.low %v104_v13, %v112_v15 }
  0x51   :  { %v128_v23 = vld [vmem:[#allocation5 + $0x1c0] sm:$0xff]  ;;  %v129_v25 = vld [vmem:[#allocation5 + $0x1c8] sm:$0xff]  ;;  %v4137_v27 = vcombine.low %v105_v16, %v113_v17  ;;  %v5318_v3 = vrot.slane %v564_v63, %v5311_v56 }
  0x52   :  { %v4152_v28 = vcombine.high %v120_v22, %v128_v23  ;;  %v4154_v29 = vcombine.high %v121_v24, %v129_v25  ;;  %v136_v30 = vld [vmem:[#allocation5 + $0x200] sm:$0xff]  ;;  %v137_v32 = vld [vmem:[#allocation5 + $0x208] sm:$0xff]  ;;  %v4151_v34 = vcombine.low %v120_v22, %v128_v23  ;;  %v4153_v38 = vcombine.low %v121_v24, %v129_v25 }
  0x53   :  { %2591 = vmatpush1.bf16.msra.mxu0 %v4119_v18  ;;  %2673 = vmatpush1.bf16.msra.mxu1 %v4121_v19  ;;  %v144_v31 = vld [vmem:[#allocation5 + $0x240] sm:$0xff]  ;;  %v145_v33 = vld [vmem:[#allocation5 + $0x248] sm:$0xff] }
  0x54   :  { %2592 = vmatprep.subr.bf16.mxu0 %v4136_v20  ;;  %2674 = vmatprep.subr.bf16.mxu1 %v4138_v21  ;;  %v4168_v39 = vcombine.high %v136_v30, %v144_v31  ;;  %v4170_v40 = vcombine.high %v137_v32, %v145_v33  ;;  %v152_v41 = vld [vmem:[#allocation5 + $0x280] sm:$0xff]  ;;  %v153_v43 = vld [vmem:[#allocation5 + $0x288] sm:$0xff]  ;;  %v4167_v45 = vcombine.low %v136_v30, %v144_v31 }
  0x55   :  { %v160_v42 = vld [vmem:[#allocation5 + $0x2c0] sm:$0xff]  ;;  %v161_v44 = vld [vmem:[#allocation5 + $0x2c8] sm:$0xff]  ;;  %v4169_v48 = vcombine.low %v137_v32, %v145_v33  ;;  %2620 = vmatprep.mubr.bf16.mxu0 %v5318_v3  ;;  %2702 = vmatprep.mubr.bf16.mxu1 %v5318_v3 }
  0x56   :  { %v4184_v49 = vcombine.high %v152_v41, %v160_v42  ;;  %v4186_v50 = vcombine.high %v153_v43, %v161_v44  ;;  %v168_v51 = vld [vmem:[#allocation5 + $0x300] sm:$0xff]  ;;  %v169_v53 = vld [vmem:[#allocation5 + $0x308] sm:$0xff]  ;;  %v4183_v55 = vcombine.low %v152_v41, %v160_v42  ;;  %v4185_v57 = vcombine.low %v153_v43, %v161_v44 }
  0x57   :  { %2593 = vmatpush1.bf16.msra.mxu0 %v4135_v26  ;;  %2675 = vmatpush1.bf16.msra.mxu1 %v4137_v27  ;;  %v176_v52 = vld [vmem:[#allocation5 + $0x340] sm:$0xff]  ;;  %v177_v54 = vld [vmem:[#allocation5 + $0x348] sm:$0xff] }
  0x58   :  { %2594 = vmatprep.subr.bf16.mxu0 %v4152_v28  ;;  %2676 = vmatprep.subr.bf16.mxu1 %v4154_v29  ;;  %v4200_v58 = vcombine.high %v168_v51, %v176_v52  ;;  %v4202_v60 = vcombine.high %v169_v53, %v177_v54  ;;  %v184_v61 = vld [vmem:[#allocation5 + $0x380] sm:$0xff]  ;;  %v185_v0 = vld [vmem:[#allocation5 + $0x388] sm:$0xff]  ;;  %v4199_v2 = vcombine.low %v168_v51, %v176_v52 }
  0x59   :  { %v192_v62 = vld [vmem:[#allocation5 + $0x3c0] sm:$0xff]  ;;  %v193_v1 = vld [vmem:[#allocation5 + $0x3c8] sm:$0xff]  ;;  %v4201_v4 = vcombine.low %v169_v53, %v177_v54 }
  0x5a   :  { %v4216_v5 = vcombine.high %v184_v61, %v192_v62  ;;  %v4218_v6 = vcombine.high %v185_v0, %v193_v1  ;;  %v200_v7 = vld [vmem:[#allocation5 + $0x400] sm:$0xff]  ;;  %v201_v9 = vld [vmem:[#allocation5 + $0x408] sm:$0xff]  ;;  %v4215_v11 = vcombine.low %v184_v61, %v192_v62  ;;  %v4217_v12 = vcombine.low %v185_v0, %v193_v1 }
  0x5b   :  { %2595 = vmatpush1.bf16.msra.mxu0 %v4151_v34  ;;  %2677 = vmatpush1.bf16.msra.mxu1 %v4153_v38  ;;  %v208_v8 = vld [vmem:[#allocation5 + $0x440] sm:$0xff]  ;;  %v209_v10 = vld [vmem:[#allocation5 + $0x448] sm:$0xff] }
  0x5c   :  { %2596 = vmatprep.subr.bf16.mxu0 %v4168_v39  ;;  %2678 = vmatprep.subr.bf16.mxu1 %v4170_v40  ;;  %v4232_v13 = vcombine.high %v200_v7, %v208_v8  ;;  %v4234_v14 = vcombine.high %v201_v9, %v209_v10  ;;  %v216_v15 = vld [vmem:[#allocation5 + $0x480] sm:$0xff]  ;;  %v217_v17 = vld [vmem:[#allocation5 + $0x488] sm:$0xff]  ;;  %v4231_v19 = vcombine.low %v200_v7, %v208_v8 }
  0x5d   :  { %v224_v16 = vld [vmem:[#allocation5 + $0x4c0] sm:$0xff]  ;;  %v225_v18 = vld [vmem:[#allocation5 + $0x4c8] sm:$0xff]  ;;  %v4233_v20 = vcombine.low %v201_v9, %v209_v10 }
  0x5e   :  { %v4248_v21 = vcombine.high %v216_v15, %v224_v16  ;;  %v4250_v22 = vcombine.high %v217_v17, %v225_v18  ;;  %v232_v23 = vld [vmem:[#allocation5 + $0x500] sm:$0xff]  ;;  %v233_v25 = vld [vmem:[#allocation5 + $0x508] sm:$0xff]  ;;  %v4247_v27 = vcombine.low %v216_v15, %v224_v16  ;;  %v4249_v28 = vcombine.low %v217_v17, %v225_v18 }
  0x5f   :  { %2597 = vmatpush1.bf16.msra.mxu0 %v4167_v45  ;;  %2679 = vmatpush1.bf16.msra.mxu1 %v4169_v48  ;;  %v240_v24 = vld [vmem:[#allocation5 + $0x540] sm:$0xff]  ;;  %v241_v26 = vld [vmem:[#allocation5 + $0x548] sm:$0xff] }
  0x60   :  { %2598 = vmatprep.subr.bf16.mxu0 %v4184_v49  ;;  %2680 = vmatprep.subr.bf16.mxu1 %v4186_v50  ;;  %v4264_v29 = vcombine.high %v232_v23, %v240_v24  ;;  %v4266_v30 = vcombine.high %v233_v25, %v241_v26  ;;  %v248_v31 = vld [vmem:[#allocation5 + $0x580] sm:$0xff]  ;;  %v249_v33 = vld [vmem:[#allocation5 + $0x588] sm:$0xff]  ;;  %v4263_v35 = vcombine.low %v232_v23, %v240_v24 }
  0x61   :  { %v256_v32 = vld [vmem:[#allocation5 + $0x5c0] sm:$0xff]  ;;  %v257_v34 = vld [vmem:[#allocation5 + $0x5c8] sm:$0xff]  ;;  %v4265_v36 = vcombine.low %v233_v25, %v241_v26 }
  0x62   :  { %v4280_v37 = vcombine.high %v248_v31, %v256_v32  ;;  %v4282_v38 = vcombine.high %v249_v33, %v257_v34  ;;  %v264_v39 = vld [vmem:[#allocation5 + $0x600] sm:$0xff]  ;;  %v265_v41 = vld [vmem:[#allocation5 + $0x608] sm:$0xff]  ;;  %v4279_v43 = vcombine.low %v248_v31, %v256_v32  ;;  %v4281_v44 = vcombine.low %v249_v33, %v257_v34 }
  0x63   :  { %2599 = vmatpush1.bf16.msra.mxu0 %v4183_v55  ;;  %2681 = vmatpush1.bf16.msra.mxu1 %v4185_v57  ;;  %v272_v40 = vld [vmem:[#allocation5 + $0x640] sm:$0xff]  ;;  %v273_v42 = vld [vmem:[#allocation5 + $0x648] sm:$0xff] }
  0x64   :  { %2600 = vmatprep.subr.bf16.mxu0 %v4200_v58  ;;  %2682 = vmatprep.subr.bf16.mxu1 %v4202_v60  ;;  %v4296_v45 = vcombine.high %v264_v39, %v272_v40  ;;  %v4298_v47 = vcombine.high %v265_v41, %v273_v42  ;;  %v280_v48 = vld [vmem:[#allocation5 + $0x680] sm:$0xff]  ;;  %v281_v50 = vld [vmem:[#allocation5 + $0x688] sm:$0xff]  ;;  %v4295_v52 = vcombine.low %v264_v39, %v272_v40 }
  0x65   :  { %v288_v49 = vld [vmem:[#allocation5 + $0x6c0] sm:$0xff]  ;;  %v289_v51 = vld [vmem:[#allocation5 + $0x6c8] sm:$0xff]  ;;  %v4297_v53 = vcombine.low %v265_v41, %v273_v42 }
  0x66   :  { %v4312_v54 = vcombine.high %v280_v48, %v288_v49  ;;  %v4314_v55 = vcombine.high %v281_v50, %v289_v51  ;;  %v296_v57 = vld [vmem:[#allocation5 + $0x700] sm:$0xff]  ;;  %v297_v60 = vld [vmem:[#allocation5 + $0x708] sm:$0xff]  ;;  %v4311_v62 = vcombine.low %v280_v48, %v288_v49  ;;  %v4313_v63 = vcombine.low %v281_v50, %v289_v51 }
  0x67   :  { %2601 = vmatpush1.bf16.msra.mxu0 %v4199_v2  ;;  %2683 = vmatpush1.bf16.msra.mxu1 %v4201_v4  ;;  %v304_v58 = vld [vmem:[#allocation5 + $0x740] sm:$0xff]  ;;  %v305_v61 = vld [vmem:[#allocation5 + $0x748] sm:$0xff] }
  0x68   :  { %2602 = vmatprep.subr.bf16.mxu0 %v4216_v5  ;;  %2684 = vmatprep.subr.bf16.mxu1 %v4218_v6  ;;  %v4328_v0 = vcombine.high %v296_v57, %v304_v58  ;;  %v4330_v1 = vcombine.high %v297_v60, %v305_v61  ;;  %v312_v2 = vld [vmem:[#allocation5 + $0x780] sm:$0xff]  ;;  %v313_v5 = vld [vmem:[#allocation5 + $0x788] sm:$0xff]  ;;  %v4327_v7 = vcombine.low %v296_v57, %v304_v58 }
  0x69   :  { %v320_v4 = vld [vmem:[#allocation5 + $0x7c0] sm:$0xff]  ;;  %v321_v6 = vld [vmem:[#allocation5 + $0x7c8] sm:$0xff]  ;;  %v4329_v8 = vcombine.low %v297_v60, %v305_v61 }
  0x6a   :  { %v4344_v9 = vcombine.high %v312_v2, %v320_v4  ;;  %v4346_v10 = vcombine.high %v313_v5, %v321_v6  ;;  %v4343_v15 = vcombine.low %v312_v2, %v320_v4  ;;  %v4345_v16 = vcombine.low %v313_v5, %v321_v6  ;;  %v353_v23 = vld [vmem:[#allocation5 + $0x8c8] sm:$0xff] }
  0x6b   :  { %2603 = vmatpush1.bf16.msra.mxu0 %v4215_v11  ;;  %2685 = vmatpush1.bf16.msra.mxu1 %v4217_v12  ;;  %v328_v11 = vld [vmem:[#allocation5 + $0x800] sm:$0xff] }
  0x6c   :  { %2604 = vmatprep.subr.bf16.mxu0 %v4232_v13  ;;  %2686 = vmatprep.subr.bf16.mxu1 %v4234_v14  ;;  %v336_v12 = vld [vmem:[#allocation5 + $0x840] sm:$0xff]  ;;  %v329_v13 = vld [vmem:[#allocation5 + $0x808] sm:$0xff] }
  0x6d   :  { %v337_v14 = vld [vmem:[#allocation5 + $0x848] sm:$0xff]  ;;  %v4360_v17 = vcombine.high %v328_v11, %v336_v12  ;;  %v4359_v24 = vcombine.low %v328_v11, %v336_v12 }
  0x6e   :  { %v4362_v18 = vcombine.high %v329_v13, %v337_v14  ;;  %v4361_v25 = vcombine.low %v329_v13, %v337_v14 }
  0x6f   :  { %2605 = vmatpush1.bf16.msra.mxu0 %v4231_v19  ;;  %2687 = vmatpush1.bf16.msra.mxu1 %v4233_v20  ;;  %v344_v19 = vld [vmem:[#allocation5 + $0x880] sm:$0xff] }
  0x70   :  { %2606 = vmatprep.subr.bf16.mxu0 %v4248_v21  ;;  %2688 = vmatprep.subr.bf16.mxu1 %v4250_v22  ;;  %v352_v20 = vld [vmem:[#allocation5 + $0x8c0] sm:$0xff]  ;;  %v5324_v21 = vrot.slane %v5313_v59, %v5311_v56  ;;  %v345_v22 = vld [vmem:[#allocation5 + $0x888] sm:$0xff] }
  0x71   :  { %v4376_v26 = vcombine.high %v344_v19, %v352_v20  ;;  %v361_v56 = vld [vmem:[#allocation5 + $0x908] sm:$0xff]  ;;  %v4375_v31 = vcombine.low %v344_v19, %v352_v20  ;;  %v4377_v32 = vcombine.low %v345_v22, %v353_v23 }
  0x72   :  { %v369_v59 = vld [vmem:[#allocation5 + $0x948] sm:$0xff] }
  0x73   :  { %2607 = vmatpush1.bf16.msra.mxu0 %v4247_v27  ;;  %2689 = vmatpush1.bf16.msra.mxu1 %v4249_v28  ;;  %v4378_v27 = vcombine.high %v345_v22, %v353_v23  ;;  %v360_v28 = vld [vmem:[#allocation5 + $0x900] sm:$0xff]  ;;  %v4394_v34 = vcombine.high %v361_v56, %v369_v59  ;;  %v4393_v40 = vcombine.low %v361_v56, %v369_v59 }
  0x74   :  { %2608 = vmatprep.subr.bf16.mxu0 %v4264_v29  ;;  %2690 = vmatprep.subr.bf16.mxu1 %v4266_v30  ;;  %v368_v29 = vld [vmem:[#allocation5 + $0x940] sm:$0xff]  ;;  %v5328_v30 = vcombine.high %v5318_v3, %v5318_v3 }
  0x75   :  { %v4392_v33 = vcombine.high %v360_v28, %v368_v29  ;;  %v4391_v39 = vcombine.low %v360_v28, %v368_v29 }
  0x77   :  { %2609 = vmatpush1.bf16.msra.mxu0 %v4263_v35  ;;  %2691 = vmatpush1.bf16.msra.mxu1 %v4265_v36  ;;  %v376_v35 = vld [vmem:[#allocation5 + $0x980] sm:$0xff] }
  0x78   :  { %2610 = vmatprep.subr.bf16.mxu0 %v4280_v37  ;;  %2692 = vmatprep.subr.bf16.mxu1 %v4282_v38  ;;  %v384_v36 = vld [vmem:[#allocation5 + $0x9c0] sm:$0xff]  ;;  %v377_v37 = vld [vmem:[#allocation5 + $0x988] sm:$0xff] }
  0x79   :  { %v385_v38 = vld [vmem:[#allocation5 + $0x9c8] sm:$0xff]  ;;  %v4408_v41 = vcombine.high %v376_v35, %v384_v36  ;;  %v4407_v48 = vcombine.low %v376_v35, %v384_v36  ;;  %v99_v35 = vld [vmem:[#allocation5 + $0xd8] sm:$0xff] }
  0x7a   :  { %v4410_v42 = vcombine.high %v377_v37, %v385_v38  ;;  %v4409_v49 = vcombine.low %v377_v37, %v385_v38 }
  0x7b   :  { %2611 = vmatpush1.bf16.msra.mxu0 %v4279_v43  ;;  %2693 = vmatpush1.bf16.msra.mxu1 %v4281_v44  ;;  %v392_v43 = vld [vmem:[#allocation5 + $0xa00] sm:$0xff] }
  0x7c   :  { %2612 = vmatprep.subr.bf16.mxu0 %v4296_v45  ;;  %2694 = vmatprep.subr.bf16.mxu1 %v4298_v47  ;;  %v400_v44 = vld [vmem:[#allocation5 + $0xa40] sm:$0xff]  ;;  %v393_v45 = vld [vmem:[#allocation5 + $0xa08] sm:$0xff] }
  0x7d   :  { %v401_v47 = vld [vmem:[#allocation5 + $0xa48] sm:$0xff]  ;;  %v4424_v50 = vcombine.high %v392_v43, %v400_v44  ;;  %v4423_v57 = vcombine.low %v392_v43, %v400_v44  ;;  %v115_v43 = vld [vmem:[#allocation5 + $0x158] sm:$0xff] }
  0x7e   :  { %v4426_v51 = vcombine.high %v393_v45, %v401_v47  ;;  %v4425_v58 = vcombine.low %v393_v45, %v401_v47 }
  0x7f   :  { %2613 = vmatpush1.bf16.msra.mxu0 %v4295_v52  ;;  %2695 = vmatpush1.bf16.msra.mxu1 %v4297_v53  ;;  %v408_v52 = vld [vmem:[#allocation5 + $0xa80] sm:$0xff] }
  0x80   :  { %2614 = vmatprep.subr.bf16.mxu0 %v4312_v54  ;;  %2696 = vmatprep.subr.bf16.mxu1 %v4314_v55  ;;  %v416_v53 = vld [vmem:[#allocation5 + $0xac0] sm:$0xff]  ;;  %v409_v54 = vld [vmem:[#allocation5 + $0xa88] sm:$0xff] }
  0x81   :  { %v417_v55 = vld [vmem:[#allocation5 + $0xac8] sm:$0xff]  ;;  %v4440_v60 = vcombine.high %v408_v52, %v416_v53  ;;  %v4439_v2 = vcombine.low %v408_v52, %v416_v53  ;;  %v131_v52 = vld [vmem:[#allocation5 + $0x1d8] sm:$0xff] }
  0x82   :  { %v4442_v61 = vcombine.high %v409_v54, %v417_v55  ;;  %v4441_v4 = vcombine.low %v409_v54, %v417_v55 }
  0x83   :  { %2615 = vmatpush1.bf16.msra.mxu0 %v4311_v62  ;;  %2697 = vmatpush1.bf16.msra.mxu1 %v4313_v63  ;;  %v424_v62 = vld [vmem:[#allocation5 + $0xb00] sm:$0xff] }
  0x84   :  { %2616 = vmatprep.subr.bf16.mxu0 %v4328_v0  ;;  %2698 = vmatprep.subr.bf16.mxu1 %v4330_v1  ;;  %v432_v63 = vld [vmem:[#allocation5 + $0xb40] sm:$0xff]  ;;  %v425_v0 = vld [vmem:[#allocation5 + $0xb08] sm:$0xff] }
  0x85   :  { %v433_v1 = vld [vmem:[#allocation5 + $0xb48] sm:$0xff]  ;;  %v4456_v5 = vcombine.high %v424_v62, %v432_v63  ;;  %v4455_v11 = vcombine.low %v424_v62, %v432_v63  ;;  %v147_v62 = vld [vmem:[#allocation5 + $0x258] sm:$0xff] }
  0x86   :  { %v4458_v6 = vcombine.high %v425_v0, %v433_v1  ;;  %v4457_v12 = vcombine.low %v425_v0, %v433_v1 }
  0x87   :  { %2617 = vmatpush1.bf16.msra.mxu0 %v4327_v7  ;;  %2699 = vmatpush1.bf16.msra.mxu1 %v4329_v8  ;;  %v440_v7 = vld [vmem:[#allocation5 + $0xb80] sm:$0xff] }
  0x88   :  { %2618 = vmatprep.subr.bf16.mxu0 %v4344_v9  ;;  %2700 = vmatprep.subr.bf16.mxu1 %v4346_v10  ;;  %v448_v8 = vld [vmem:[#allocation5 + $0xbc0] sm:$0xff]  ;;  %v441_v9 = vld [vmem:[#allocation5 + $0xb88] sm:$0xff] }
  0x89   :  { %v449_v10 = vld [vmem:[#allocation5 + $0xbc8] sm:$0xff]  ;;  %v4472_v13 = vcombine.high %v440_v7, %v448_v8  ;;  %v4471_v19 = vcombine.low %v440_v7, %v448_v8  ;;  %v163_v7 = vld [vmem:[#allocation5 + $0x2d8] sm:$0xff] }
  0x8a   :  { %v4474_v14 = vcombine.high %v441_v9, %v449_v10  ;;  %v4473_v20 = vcombine.low %v441_v9, %v449_v10 }
  0x8b   :  { %2619 = vmatpush1.bf16.msra.mxu0 %v4343_v15  ;;  %2701 = vmatpush1.bf16.msra.mxu1 %v4345_v16  ;;  %v456_v15 = vld [vmem:[#allocation5 + $0xc00] sm:$0xff] }
  0x8c   :  { %2629 = vmatprep.subr.bf16.mxu0 %v4360_v17  ;;  %2711 = vmatprep.subr.bf16.mxu1 %v4362_v18  ;;  %v464_v16 = vld [vmem:[#allocation5 + $0xc40] sm:$0xff]  ;;  %v457_v17 = vld [vmem:[#allocation5 + $0xc08] sm:$0xff] }
  0x8d   :  { %v465_v18 = vld [vmem:[#allocation5 + $0xc48] sm:$0xff]  ;;  %v4488_v22 = vcombine.high %v456_v15, %v464_v16  ;;  %v4487_v28 = vcombine.low %v456_v15, %v464_v16  ;;  %v179_v15 = vld [vmem:[#allocation5 + $0x358] sm:$0xff] }
  0x8e   :  { %2621 = vmatmul.mubr.bf16.vlgmr.msra.gmra.mrb[0].mxu0 %v5324_v21  ;;  %2703 = vmatmul.mubr.bf16.vlgmr.msra.gmra.mrb[0].mxu1 %v5324_v21  ;;  %v4490_v23 = vcombine.high %v457_v17, %v465_v18  ;;  %v4489_v29 = vcombine.low %v457_v17, %v465_v18 }
  0x8f   :  { %2630 = vmatpush1.bf16.msra.mxu0 %v4359_v24  ;;  %2712 = vmatpush1.bf16.msra.mxu1 %v4361_v25  ;;  %v74_v24 = vld [vmem:[#allocation5 + $0x10] sm:$0xff] }
  0x90   :  { %2631 = vmatprep.subr.bf16.mxu0 %v4376_v26  ;;  %2713 = vmatprep.subr.bf16.mxu1 %v4378_v27  ;;  %v82_v25 = vld [vmem:[#allocation5 + $0x50] sm:$0xff]  ;;  %v75_v26 = vld [vmem:[#allocation5 + $0x18] sm:$0xff] }
  0x91   :  { %4503 = vmatprep.mubr.msk.bf16.mxu0 %vm2584_vm0, %v5328_v30  ;;  %4504 = vmatprep.mubr.msk.bf16.mxu1 %vm2584_vm0, %v5328_v30  ;;  %v83_v27 = vld [vmem:[#allocation5 + $0x58] sm:$0xff]  ;;  %v4108_v56 = vcombine.high %v74_v24, %v82_v25  ;;  %v4107_v36 = vcombine.low %v74_v24, %v82_v25 }
  0x92   :  { %v4110_v59 = vcombine.high %v75_v26, %v83_v27  ;;  %v4109_v37 = vcombine.low %v75_v26, %v83_v27  ;;  %v195_v24 = vld [vmem:[#allocation5 + $0x3d8] sm:$0xff] }
  0x93   :  { %2632 = vmatpush1.bf16.msra.mxu0 %v4375_v31  ;;  %2714 = vmatpush1.bf16.msra.mxu1 %v4377_v32  ;;  %v90_v31 = vld [vmem:[#allocation5 + $0x90] sm:$0xff] }
  0x94   :  { %2633 = vmatprep.subr.bf16.mxu0 %v4392_v33  ;;  %2715 = vmatprep.subr.bf16.mxu1 %v4394_v34  ;;  %v98_v32 = vld [vmem:[#allocation5 + $0xd0] sm:$0xff]  ;;  %v5338_v33 = vcombine.high %v5324_v21, %v5324_v21  ;;  %v91_v34 = vld [vmem:[#allocation5 + $0x98] sm:$0xff] }
  0x95   :  { %v4124_v38 = vcombine.high %v90_v31, %v98_v32  ;;  %v4123_v44 = vcombine.low %v90_v31, %v98_v32  ;;  %v4125_v45 = vcombine.low %v91_v34, %v99_v35  ;;  %v211_v31 = vld [vmem:[#allocation5 + $0x458] sm:$0xff] }
  0x97   :  { %2634 = vmatpush1.bf16.msra.mxu0 %v4391_v39  ;;  %2716 = vmatpush1.bf16.msra.mxu1 %v4393_v40  ;;  %v4126_v39 = vcombine.high %v91_v34, %v99_v35  ;;  %v106_v40 = vld [vmem:[#allocation5 + $0x110] sm:$0xff] }
  0x98   :  { %2635 = vmatprep.subr.bf16.mxu0 %v4408_v41  ;;  %2717 = vmatprep.subr.bf16.mxu1 %v4410_v42  ;;  %v114_v41 = vld [vmem:[#allocation5 + $0x150] sm:$0xff]  ;;  %v107_v42 = vld [vmem:[#allocation5 + $0x118] sm:$0xff] }
  0x99   :  { %v4140_v47 = vcombine.high %v106_v40, %v114_v41  ;;  %v4139_v53 = vcombine.low %v106_v40, %v114_v41  ;;  %v4141_v54 = vcombine.low %v107_v42, %v115_v43  ;;  %v227_v40 = vld [vmem:[#allocation5 + $0x4d8] sm:$0xff] }
  0x9b   :  { %2636 = vmatpush1.bf16.msra.mxu0 %v4407_v48  ;;  %2718 = vmatpush1.bf16.msra.mxu1 %v4409_v49  ;;  %v4142_v48 = vcombine.high %v107_v42, %v115_v43  ;;  %v122_v49 = vld [vmem:[#allocation5 + $0x190] sm:$0xff] }
  0x9c   :  { %2637 = vmatprep.subr.bf16.mxu0 %v4424_v50  ;;  %2719 = vmatprep.subr.bf16.mxu1 %v4426_v51  ;;  %v130_v50 = vld [vmem:[#allocation5 + $0x1d0] sm:$0xff]  ;;  %v123_v51 = vld [vmem:[#allocation5 + $0x198] sm:$0xff] }
  0x9d   :  { %v4156_v55 = vcombine.high %v122_v49, %v130_v50  ;;  %v4155_v63 = vcombine.low %v122_v49, %v130_v50  ;;  %v4157_v0 = vcombine.low %v123_v51, %v131_v52  ;;  %v243_v49 = vld [vmem:[#allocation5 + $0x558] sm:$0xff] }
  0x9f   :  { %2638 = vmatpush1.bf16.msra.mxu0 %v4423_v57  ;;  %2720 = vmatpush1.bf16.msra.mxu1 %v4425_v58  ;;  %v4158_v57 = vcombine.high %v123_v51, %v131_v52  ;;  %v138_v58 = vld [vmem:[#allocation5 + $0x210] sm:$0xff] }
  0xa0   :  { %2639 = vmatprep.subr.bf16.mxu0 %v4440_v60  ;;  %2721 = vmatprep.subr.bf16.mxu1 %v4442_v61  ;;  %v146_v60 = vld [vmem:[#allocation5 + $0x250] sm:$0xff]  ;;  %v139_v61 = vld [vmem:[#allocation5 + $0x218] sm:$0xff] }
  0xa1   :  { %v4172_v1 = vcombine.high %v138_v58, %v146_v60  ;;  %v4171_v8 = vcombine.low %v138_v58, %v146_v60  ;;  %v4173_v9 = vcombine.low %v139_v61, %v147_v62  ;;  %v259_v58 = vld [vmem:[#allocation5 + $0x5d8] sm:$0xff] }
  0xa3   :  { %2640 = vmatpush1.bf16.msra.mxu0 %v4439_v2  ;;  %2722 = vmatpush1.bf16.msra.mxu1 %v4441_v4  ;;  %v4174_v2 = vcombine.high %v139_v61, %v147_v62  ;;  %v154_v4 = vld [vmem:[#allocation5 + $0x290] sm:$0xff] }
  0xa4   :  { %2641 = vmatprep.subr.bf16.mxu0 %v4456_v5  ;;  %2723 = vmatprep.subr.bf16.mxu1 %v4458_v6  ;;  %v162_v5 = vld [vmem:[#allocation5 + $0x2d0] sm:$0xff]  ;;  %v155_v6 = vld [vmem:[#allocation5 + $0x298] sm:$0xff] }
  0xa5   :  { %v4188_v10 = vcombine.high %v154_v4, %v162_v5  ;;  %v4187_v16 = vcombine.low %v154_v4, %v162_v5  ;;  %v4189_v17 = vcombine.low %v155_v6, %v163_v7  ;;  %v275_v4 = vld [vmem:[#allocation5 + $0x658] sm:$0xff] }
  0xa7   :  { %2642 = vmatpush1.bf16.msra.mxu0 %v4455_v11  ;;  %2724 = vmatpush1.bf16.msra.mxu1 %v4457_v12  ;;  %v4190_v11 = vcombine.high %v155_v6, %v163_v7  ;;  %v170_v12 = vld [vmem:[#allocation5 + $0x310] sm:$0xff] }
  0xa8   :  { %2643 = vmatprep.subr.bf16.mxu0 %v4472_v13  ;;  %2725 = vmatprep.subr.bf16.mxu1 %v4474_v14  ;;  %v178_v13 = vld [vmem:[#allocation5 + $0x350] sm:$0xff]  ;;  %v171_v14 = vld [vmem:[#allocation5 + $0x318] sm:$0xff] }
  0xa9   :  { %v4204_v18 = vcombine.high %v170_v12, %v178_v13  ;;  %v4203_v25 = vcombine.low %v170_v12, %v178_v13  ;;  %v4205_v26 = vcombine.low %v171_v14, %v179_v15  ;;  %v291_v12 = vld [vmem:[#allocation5 + $0x6d8] sm:$0xff] }
  0xab   :  { %2644 = vmatpush1.bf16.msra.mxu0 %v4471_v19  ;;  %2726 = vmatpush1.bf16.msra.mxu1 %v4473_v20  ;;  %v4206_v19 = vcombine.high %v171_v14, %v179_v15  ;;  %v186_v20 = vld [vmem:[#allocation5 + $0x390] sm:$0xff] }
  0xac   :  { %2645 = vmatprep.subr.bf16.mxu0 %v4488_v22  ;;  %2727 = vmatprep.subr.bf16.mxu1 %v4490_v23  ;;  %v194_v22 = vld [vmem:[#allocation5 + $0x3d0] sm:$0xff]  ;;  %v187_v23 = vld [vmem:[#allocation5 + $0x398] sm:$0xff] }
  0xad   :  { %v4220_v27 = vcombine.high %v186_v20, %v194_v22  ;;  %v4219_v32 = vcombine.low %v186_v20, %v194_v22  ;;  %v4221_v34 = vcombine.low %v187_v23, %v195_v24  ;;  %v307_v20 = vld [vmem:[#allocation5 + $0x758] sm:$0xff] }
  0xaf   :  { %2646 = vmatpush1.bf16.msra.mxu0 %v4487_v28  ;;  %2728 = vmatpush1.bf16.msra.mxu1 %v4489_v29  ;;  %v4222_v28 = vcombine.high %v187_v23, %v195_v24  ;;  %v202_v29 = vld [vmem:[#allocation5 + $0x410] sm:$0xff] }
  0xb0   :  { %2752 = vmatprep.subr.bf16.mxu0 %v4108_v56  ;;  %2834 = vmatprep.subr.bf16.mxu1 %v4110_v59  ;;  %v210_v56 = vld [vmem:[#allocation5 + $0x450] sm:$0xff]  ;;  %v203_v59 = vld [vmem:[#allocation5 + $0x418] sm:$0xff] }
  0xb1   :  { %v4236_v35 = vcombine.high %v202_v29, %v210_v56  ;;  %v4235_v41 = vcombine.low %v202_v29, %v210_v56  ;;  %v4237_v42 = vcombine.low %v203_v59, %v211_v31  ;;  %v323_v29 = vld [vmem:[#allocation5 + $0x7d8] sm:$0xff] }
  0xb2   :  { %2662 = vmatmul.mubr.bf16.vlgmr.msra.gmra.mrb[0].mxu0 %v5338_v33  ;;  %2744 = vmatmul.mubr.bf16.vlgmr.msra.gmra.mrb[0].mxu1 %v5338_v33 }
  0xb3   :  { %2753 = vmatpush1.bf16.msra.mxu0 %v4107_v36  ;;  %2835 = vmatpush1.bf16.msra.mxu1 %v4109_v37  ;;  %v4238_v36 = vcombine.high %v203_v59, %v211_v31  ;;  %v218_v37 = vld [vmem:[#allocation5 + $0x490] sm:$0xff] }
  0xb4   :  { %2754 = vmatprep.subr.bf16.mxu0 %v4124_v38  ;;  %2836 = vmatprep.subr.bf16.mxu1 %v4126_v39  ;;  %v226_v38 = vld [vmem:[#allocation5 + $0x4d0] sm:$0xff]  ;;  %v219_v39 = vld [vmem:[#allocation5 + $0x498] sm:$0xff] }
  0xb5   :  { %2784 = vmatprep.mubr.bf16.mxu0 %v5318_v3  ;;  %2866 = vmatprep.mubr.bf16.mxu1 %v5318_v3  ;;  %v4252_v43 = vcombine.high %v218_v37, %v226_v38  ;;  %v4251_v50 = vcombine.low %v218_v37, %v226_v38  ;;  %v4253_v51 = vcombine.low %v219_v39, %v227_v40  ;;  %v339_v37 = vld [vmem:[#allocation5 + $0x858] sm:$0xff] }
  0xb7   :  { %2755 = vmatpush1.bf16.msra.mxu0 %v4123_v44  ;;  %2837 = vmatpush1.bf16.msra.mxu1 %v4125_v45  ;;  %v4254_v44 = vcombine.high %v219_v39, %v227_v40  ;;  %v234_v45 = vld [vmem:[#allocation5 + $0x510] sm:$0xff] }
  0xb8   :  { %2756 = vmatprep.subr.bf16.mxu0 %v4140_v47  ;;  %2838 = vmatprep.subr.bf16.mxu1 %v4142_v48  ;;  %v242_v47 = vld [vmem:[#allocation5 + $0x550] sm:$0xff]  ;;  %v235_v48 = vld [vmem:[#allocation5 + $0x518] sm:$0xff] }
  0xb9   :  { %v4268_v52 = vcombine.high %v234_v45, %v242_v47  ;;  %v4267_v60 = vcombine.low %v234_v45, %v242_v47  ;;  %v4269_v61 = vcombine.low %v235_v48, %v243_v49  ;;  %v355_v45 = vld [vmem:[#allocation5 + $0x8d8] sm:$0xff] }
  0xbb   :  { %2757 = vmatpush1.bf16.msra.mxu0 %v4139_v53  ;;  %2839 = vmatpush1.bf16.msra.mxu1 %v4141_v54  ;;  %v4270_v53 = vcombine.high %v235_v48, %v243_v49  ;;  %v250_v54 = vld [vmem:[#allocation5 + $0x590] sm:$0xff] }
  0xbc   :  { %2758 = vmatprep.subr.bf16.mxu0 %v4156_v55  ;;  %2840 = vmatprep.subr.bf16.mxu1 %v4158_v57  ;;  %v258_v55 = vld [vmem:[#allocation5 + $0x5d0] sm:$0xff]  ;;  %v251_v57 = vld [vmem:[#allocation5 + $0x598] sm:$0xff] }
  0xbd   :  { %v4284_v62 = vcombine.high %v250_v54, %v258_v55  ;;  %v4283_v5 = vcombine.low %v250_v54, %v258_v55  ;;  %v4285_v6 = vcombine.low %v251_v57, %v259_v58  ;;  %v371_v54 = vld [vmem:[#allocation5 + $0x958] sm:$0xff] }
  0xbf   :  { %2759 = vmatpush1.bf16.msra.mxu0 %v4155_v63  ;;  %2841 = vmatpush1.bf16.msra.mxu1 %v4157_v0  ;;  %v4286_v63 = vcombine.high %v251_v57, %v259_v58  ;;  %v266_v0 = vld [vmem:[#allocation5 + $0x610] sm:$0xff] }
  0xc0   :  { %2760 = vmatprep.subr.bf16.mxu0 %v4172_v1  ;;  %2842 = vmatprep.subr.bf16.mxu1 %v4174_v2  ;;  %v274_v1 = vld [vmem:[#allocation5 + $0x650] sm:$0xff]  ;;  %v267_v2 = vld [vmem:[#allocation5 + $0x618] sm:$0xff] }
  0xc1   :  { %v4300_v7 = vcombine.high %v266_v0, %v274_v1  ;;  %v4299_v13 = vcombine.low %v266_v0, %v274_v1  ;;  %v4301_v14 = vcombine.low %v267_v2, %v275_v4  ;;  %v387_v0 = vld [vmem:[#allocation5 + $0x9d8] sm:$0xff] }
  0xc3   :  { %2761 = vmatpush1.bf16.msra.mxu0 %v4171_v8  ;;  %2843 = vmatpush1.bf16.msra.mxu1 %v4173_v9  ;;  %v4302_v8 = vcombine.high %v267_v2, %v275_v4  ;;  %v282_v9 = vld [vmem:[#allocation5 + $0x690] sm:$0xff] }
  0xc4   :  { %2762 = vmatprep.subr.bf16.mxu0 %v4188_v10  ;;  %2844 = vmatprep.subr.bf16.mxu1 %v4190_v11  ;;  %v290_v10 = vld [vmem:[#allocation5 + $0x6d0] sm:$0xff]  ;;  %v283_v11 = vld [vmem:[#allocation5 + $0x698] sm:$0xff] }
  0xc5   :  { %v4316_v15 = vcombine.high %v282_v9, %v290_v10  ;;  %v4315_v22 = vcombine.low %v282_v9, %v290_v10  ;;  %v4317_v23 = vcombine.low %v283_v11, %v291_v12  ;;  %v403_v9 = vld [vmem:[#allocation5 + $0xa58] sm:$0xff] }
  0xc7   :  { %2763 = vmatpush1.bf16.msra.mxu0 %v4187_v16  ;;  %2845 = vmatpush1.bf16.msra.mxu1 %v4189_v17  ;;  %v4318_v16 = vcombine.high %v283_v11, %v291_v12  ;;  %v298_v17 = vld [vmem:[#allocation5 + $0x710] sm:$0xff] }
  0xc8   :  { %2764 = vmatprep.subr.bf16.mxu0 %v4204_v18  ;;  %2846 = vmatprep.subr.bf16.mxu1 %v4206_v19  ;;  %v306_v18 = vld [vmem:[#allocation5 + $0x750] sm:$0xff]  ;;  %v299_v19 = vld [vmem:[#allocation5 + $0x718] sm:$0xff] }
  0xc9   :  { %v4332_v24 = vcombine.high %v298_v17, %v306_v18  ;;  %v4331_v56 = vcombine.low %v298_v17, %v306_v18  ;;  %v4333_v59 = vcombine.low %v299_v19, %v307_v20  ;;  %v419_v17 = vld [vmem:[#allocation5 + $0xad8] sm:$0xff] }
  0xcb   :  { %2765 = vmatpush1.bf16.msra.mxu0 %v4203_v25  ;;  %2847 = vmatpush1.bf16.msra.mxu1 %v4205_v26  ;;  %v4334_v25 = vcombine.high %v299_v19, %v307_v20  ;;  %v314_v26 = vld [vmem:[#allocation5 + $0x790] sm:$0xff] }
  0xcc   :  { %2766 = vmatprep.subr.bf16.mxu0 %v4220_v27  ;;  %2848 = vmatprep.subr.bf16.mxu1 %v4222_v28  ;;  %v322_v27 = vld [vmem:[#allocation5 + $0x7d0] sm:$0xff]  ;;  %v315_v28 = vld [vmem:[#allocation5 + $0x798] sm:$0xff] }
  0xcd   :  { %v4348_v31 = vcombine.high %v314_v26, %v322_v27  ;;  %v4347_v38 = vcombine.low %v314_v26, %v322_v27  ;;  %v4349_v39 = vcombine.low %v315_v28, %v323_v29  ;;  %v435_v26 = vld [vmem:[#allocation5 + $0xb58] sm:$0xff] }
  0xcf   :  { %2767 = vmatpush1.bf16.msra.mxu0 %v4219_v32  ;;  %2849 = vmatpush1.bf16.msra.mxu1 %v4221_v34  ;;  %v4350_v32 = vcombine.high %v315_v28, %v323_v29  ;;  %v330_v34 = vld [vmem:[#allocation5 + $0x810] sm:$0xff] }
  0xd0   :  { %2768 = vmatprep.subr.bf16.mxu0 %v4236_v35  ;;  %2850 = vmatprep.subr.bf16.mxu1 %v4238_v36  ;;  %v338_v35 = vld [vmem:[#allocation5 + $0x850] sm:$0xff]  ;;  %v331_v36 = vld [vmem:[#allocation5 + $0x818] sm:$0xff] }
  0xd1   :  { %v4364_v40 = vcombine.high %v330_v34, %v338_v35  ;;  %v4363_v47 = vcombine.low %v330_v34, %v338_v35  ;;  %v4365_v48 = vcombine.low %v331_v36, %v339_v37  ;;  %v451_v34 = vld [vmem:[#allocation5 + $0xbd8] sm:$0xff] }
  0xd3   :  { %2769 = vmatpush1.bf16.msra.mxu0 %v4235_v41  ;;  %2851 = vmatpush1.bf16.msra.mxu1 %v4237_v42  ;;  %v4366_v41 = vcombine.high %v331_v36, %v339_v37  ;;  %v346_v42 = vld [vmem:[#allocation5 + $0x890] sm:$0xff] }
  0xd4   :  { %2770 = vmatprep.subr.bf16.mxu0 %v4252_v43  ;;  %2852 = vmatprep.subr.bf16.mxu1 %v4254_v44  ;;  %v354_v43 = vld [vmem:[#allocation5 + $0x8d0] sm:$0xff]  ;;  %v347_v44 = vld [vmem:[#allocation5 + $0x898] sm:$0xff] }
  0xd5   :  { %v4380_v49 = vcombine.high %v346_v42, %v354_v43  ;;  %v4379_v55 = vcombine.low %v346_v42, %v354_v43  ;;  %v4381_v57 = vcombine.low %v347_v44, %v355_v45  ;;  %v467_v42 = vld [vmem:[#allocation5 + $0xc58] sm:$0xff] }
  0xd7   :  { %2771 = vmatpush1.bf16.msra.mxu0 %v4251_v50  ;;  %2853 = vmatpush1.bf16.msra.mxu1 %v4253_v51  ;;  %v4382_v50 = vcombine.high %v347_v44, %v355_v45  ;;  %v362_v51 = vld [vmem:[#allocation5 + $0x910] sm:$0xff] }
  0xd8   :  { %2772 = vmatprep.subr.bf16.mxu0 %v4268_v52  ;;  %2854 = vmatprep.subr.bf16.mxu1 %v4270_v53  ;;  %v370_v52 = vld [vmem:[#allocation5 + $0x950] sm:$0xff]  ;;  %v363_v53 = vld [vmem:[#allocation5 + $0x918] sm:$0xff] }
  0xd9   :  { %v4396_v58 = vcombine.high %v362_v51, %v370_v52  ;;  %v4395_v1 = vcombine.low %v362_v51, %v370_v52  ;;  %v4397_v2 = vcombine.low %v363_v53, %v371_v54  ;;  %v85_v51 = vld [vmem:[#allocation5 + $0x68] sm:$0xff] }
  0xdb   :  { %2773 = vmatpush1.bf16.msra.mxu0 %v4267_v60  ;;  %2855 = vmatpush1.bf16.msra.mxu1 %v4269_v61  ;;  %v4398_v60 = vcombine.high %v363_v53, %v371_v54  ;;  %v378_v61 = vld [vmem:[#allocation5 + $0x990] sm:$0xff] }
  0xdc   :  { %2774 = vmatprep.subr.bf16.mxu0 %v4284_v62  ;;  %2856 = vmatprep.subr.bf16.mxu1 %v4286_v63  ;;  %v386_v62 = vld [vmem:[#allocation5 + $0x9d0] sm:$0xff]  ;;  %v379_v63 = vld [vmem:[#allocation5 + $0x998] sm:$0xff] }
  0xdd   :  { %v4412_v4 = vcombine.high %v378_v61, %v386_v62  ;;  %v4411_v10 = vcombine.low %v378_v61, %v386_v62  ;;  %v4413_v11 = vcombine.low %v379_v63, %v387_v0  ;;  %v101_v61 = vld [vmem:[#allocation5 + $0xe8] sm:$0xff] }
  0xdf   :  { %2775 = vmatpush1.bf16.msra.mxu0 %v4283_v5  ;;  %2857 = vmatpush1.bf16.msra.mxu1 %v4285_v6  ;;  %v4414_v5 = vcombine.high %v379_v63, %v387_v0  ;;  %v394_v6 = vld [vmem:[#allocation5 + $0xa10] sm:$0xff] }
  0xe0   :  { %2776 = vmatprep.subr.bf16.mxu0 %v4300_v7  ;;  %2858 = vmatprep.subr.bf16.mxu1 %v4302_v8  ;;  %v402_v7 = vld [vmem:[#allocation5 + $0xa50] sm:$0xff]  ;;  %v395_v8 = vld [vmem:[#allocation5 + $0xa18] sm:$0xff] }
  0xe1   :  { %v4428_v12 = vcombine.high %v394_v6, %v402_v7  ;;  %v4427_v18 = vcombine.low %v394_v6, %v402_v7  ;;  %v4429_v19 = vcombine.low %v395_v8, %v403_v9  ;;  %v117_v6 = vld [vmem:[#allocation5 + $0x168] sm:$0xff] }
  0xe3   :  { %2777 = vmatpush1.bf16.msra.mxu0 %v4299_v13  ;;  %2859 = vmatpush1.bf16.msra.mxu1 %v4301_v14  ;;  %v4430_v13 = vcombine.high %v395_v8, %v403_v9  ;;  %v410_v14 = vld [vmem:[#allocation5 + $0xa90] sm:$0xff] }
  0xe4   :  { %2778 = vmatprep.subr.bf16.mxu0 %v4316_v15  ;;  %2860 = vmatprep.subr.bf16.mxu1 %v4318_v16  ;;  %v418_v15 = vld [vmem:[#allocation5 + $0xad0] sm:$0xff]  ;;  %v411_v16 = vld [vmem:[#allocation5 + $0xa98] sm:$0xff] }
  0xe5   :  { %v4444_v20 = vcombine.high %v410_v14, %v418_v15  ;;  %v4443_v27 = vcombine.low %v410_v14, %v418_v15  ;;  %v4445_v28 = vcombine.low %v411_v16, %v419_v17  ;;  %v133_v14 = vld [vmem:[#allocation5 + $0x1e8] sm:$0xff] }
  0xe7   :  { %2779 = vmatpush1.bf16.msra.mxu0 %v4315_v22  ;;  %2861 = vmatpush1.bf16.msra.mxu1 %v4317_v23  ;;  %v4446_v22 = vcombine.high %v411_v16, %v419_v17  ;;  %v426_v23 = vld [vmem:[#allocation5 + $0xb10] sm:$0xff] }
  0xe8   :  { %2780 = vmatprep.subr.bf16.mxu0 %v4332_v24  ;;  %2862 = vmatprep.subr.bf16.mxu1 %v4334_v25  ;;  %v434_v24 = vld [vmem:[#allocation5 + $0xb50] sm:$0xff]  ;;  %v427_v25 = vld [vmem:[#allocation5 + $0xb18] sm:$0xff] }
  0xe9   :  { %v4460_v29 = vcombine.high %v426_v23, %v434_v24  ;;  %v4459_v35 = vcombine.low %v426_v23, %v434_v24  ;;  %v4461_v36 = vcombine.low %v427_v25, %v435_v26  ;;  %v149_v23 = vld [vmem:[#allocation5 + $0x268] sm:$0xff] }
  0xeb   :  { %2781 = vmatpush1.bf16.msra.mxu0 %v4331_v56  ;;  %2863 = vmatpush1.bf16.msra.mxu1 %v4333_v59  ;;  %v4462_v56 = vcombine.high %v427_v25, %v435_v26  ;;  %v442_v59 = vld [vmem:[#allocation5 + $0xb90] sm:$0xff] }
  0xec   :  { %2782 = vmatprep.subr.bf16.mxu0 %v4348_v31  ;;  %2864 = vmatprep.subr.bf16.mxu1 %v4350_v32  ;;  %v450_v31 = vld [vmem:[#allocation5 + $0xbd0] sm:$0xff]  ;;  %v443_v32 = vld [vmem:[#allocation5 + $0xb98] sm:$0xff] }
  0xed   :  { %v4476_v37 = vcombine.high %v442_v59, %v450_v31  ;;  %v4475_v43 = vcombine.low %v442_v59, %v450_v31  ;;  %v4477_v44 = vcombine.low %v443_v32, %v451_v34  ;;  %v165_v59 = vld [vmem:[#allocation5 + $0x2e8] sm:$0xff] }
  0xef   :  { %2783 = vmatpush1.bf16.msra.mxu0 %v4347_v38  ;;  %2865 = vmatpush1.bf16.msra.mxu1 %v4349_v39  ;;  %v4478_v38 = vcombine.high %v443_v32, %v451_v34  ;;  %v458_v39 = vld [vmem:[#allocation5 + $0xc10] sm:$0xff] }
  0xf0   :  { %2793 = vmatprep.subr.bf16.mxu0 %v4364_v40  ;;  %2875 = vmatprep.subr.bf16.mxu1 %v4366_v41  ;;  %v466_v40 = vld [vmem:[#allocation5 + $0xc50] sm:$0xff]  ;;  %v459_v41 = vld [vmem:[#allocation5 + $0xc18] sm:$0xff] }
  0xf1   :  { %v4492_v45 = vcombine.high %v458_v39, %v466_v40  ;;  %v4491_v52 = vcombine.low %v458_v39, %v466_v40  ;;  %v4493_v53 = vcombine.low %v459_v41, %v467_v42  ;;  %v181_v39 = vld [vmem:[#allocation5 + $0x368] sm:$0xff] }
  0xf2   :  { %2785 = vmatmul.mubr.bf16.vlgmr.msra.gmra.mrb[4].mxu0 %v5324_v21  ;;  %2867 = vmatmul.mubr.bf16.vlgmr.msra.gmra.mrb[4].mxu1 %v5324_v21 }
  0xf3   :  { %2794 = vmatpush1.bf16.msra.mxu0 %v4363_v47  ;;  %2876 = vmatpush1.bf16.msra.mxu1 %v4365_v48  ;;  %v4494_v47 = vcombine.high %v459_v41, %v467_v42  ;;  %v76_v48 = vld [vmem:[#allocation5 + $0x20] sm:$0xff] }
  0xf4   :  { %2795 = vmatprep.subr.bf16.mxu0 %v4380_v49  ;;  %2877 = vmatprep.subr.bf16.mxu1 %v4382_v50  ;;  %v84_v49 = vld [vmem:[#allocation5 + $0x60] sm:$0xff]  ;;  %v77_v50 = vld [vmem:[#allocation5 + $0x28] sm:$0xff] }
  0xf5   :  { %4505 = vmatprep.mubr.msk.bf16.mxu0 %vm2584_vm0, %v5328_v30  ;;  %4506 = vmatprep.mubr.msk.bf16.mxu1 %vm2584_vm0, %v5328_v30  ;;  %v4112_v54 = vcombine.high %v76_v48, %v84_v49  ;;  %v4111_v62 = vcombine.low %v76_v48, %v84_v49  ;;  %v4113_v63 = vcombine.low %v77_v50, %v85_v51  ;;  %v197_v48 = vld [vmem:[#allocation5 + $0x3e8] sm:$0xff] }
  0xf7   :  { %2796 = vmatpush1.bf16.msra.mxu0 %v4379_v55  ;;  %2878 = vmatpush1.bf16.msra.mxu1 %v4381_v57  ;;  %v4114_v55 = vcombine.high %v77_v50, %v85_v51  ;;  %v92_v57 = vld [vmem:[#allocation5 + $0xa0] sm:$0xff] }
  0xf8   :  { %2797 = vmatprep.subr.bf16.mxu0 %v4396_v58  ;;  %2879 = vmatprep.subr.bf16.mxu1 %v4398_v60  ;;  %v100_v58 = vld [vmem:[#allocation5 + $0xe0] sm:$0xff]  ;;  %v93_v60 = vld [vmem:[#allocation5 + $0xa8] sm:$0xff] }
  0xf9   :  { %v4128_v0 = vcombine.high %v92_v57, %v100_v58  ;;  %v4127_v7 = vcombine.low %v92_v57, %v100_v58  ;;  %v4129_v8 = vcombine.low %v93_v60, %v101_v61  ;;  %v213_v57 = vld [vmem:[#allocation5 + $0x468] sm:$0xff] }
  0xfb   :  { %2798 = vmatpush1.bf16.msra.mxu0 %v4395_v1  ;;  %2880 = vmatpush1.bf16.msra.mxu1 %v4397_v2  ;;  %v4130_v1 = vcombine.high %v93_v60, %v101_v61  ;;  %v108_v2 = vld [vmem:[#allocation5 + $0x120] sm:$0xff] }
  0xfc   :  { %2799 = vmatprep.subr.bf16.mxu0 %v4412_v4  ;;  %2881 = vmatprep.subr.bf16.mxu1 %v4414_v5  ;;  %v116_v4 = vld [vmem:[#allocation5 + $0x160] sm:$0xff]  ;;  %v109_v5 = vld [vmem:[#allocation5 + $0x128] sm:$0xff] }
  0xfd   :  { %v4144_v9 = vcombine.high %v108_v2, %v116_v4  ;;  %v4143_v15 = vcombine.low %v108_v2, %v116_v4  ;;  %v4145_v16 = vcombine.low %v109_v5, %v117_v6  ;;  %v229_v2 = vld [vmem:[#allocation5 + $0x4e8] sm:$0xff] }
  0xff   :  { %2800 = vmatpush1.bf16.msra.mxu0 %v4411_v10  ;;  %2882 = vmatpush1.bf16.msra.mxu1 %v4413_v11  ;;  %v4146_v10 = vcombine.high %v109_v5, %v117_v6  ;;  %v124_v11 = vld [vmem:[#allocation5 + $0x1a0] sm:$0xff] }
 0x100   :  { %2801 = vmatprep.subr.bf16.mxu0 %v4428_v12  ;;  %2883 = vmatprep.subr.bf16.mxu1 %v4430_v13  ;;  %v132_v12 = vld [vmem:[#allocation5 + $0x1e0] sm:$0xff]  ;;  %v125_v13 = vld [vmem:[#allocation5 + $0x1a8] sm:$0xff] }
 0x101   :  { %v4160_v17 = vcombine.high %v124_v11, %v132_v12  ;;  %v4159_v24 = vcombine.low %v124_v11, %v132_v12  ;;  %v4161_v25 = vcombine.low %v125_v13, %v133_v14  ;;  %v245_v11 = vld [vmem:[#allocation5 + $0x568] sm:$0xff] }
 0x103   :  { %2802 = vmatpush1.bf16.msra.mxu0 %v4427_v18  ;;  %2884 = vmatpush1.bf16.msra.mxu1 %v4429_v19  ;;  %v4162_v18 = vcombine.high %v125_v13, %v133_v14  ;;  %v140_v19 = vld [vmem:[#allocation5 + $0x220] sm:$0xff] }
 0x104   :  { %2803 = vmatprep.subr.bf16.mxu0 %v4444_v20  ;;  %2885 = vmatprep.subr.bf16.mxu1 %v4446_v22  ;;  %v148_v20 = vld [vmem:[#allocation5 + $0x260] sm:$0xff]  ;;  %v141_v22 = vld [vmem:[#allocation5 + $0x228] sm:$0xff] }
 0x105   :  { %v4176_v26 = vcombine.high %v140_v19, %v148_v20  ;;  %v4175_v31 = vcombine.low %v140_v19, %v148_v20  ;;  %v4177_v32 = vcombine.low %v141_v22, %v149_v23  ;;  %v261_v19 = vld [vmem:[#allocation5 + $0x5e8] sm:$0xff] }
 0x107   :  { %2804 = vmatpush1.bf16.msra.mxu0 %v4443_v27  ;;  %2886 = vmatpush1.bf16.msra.mxu1 %v4445_v28  ;;  %v4178_v27 = vcombine.high %v141_v22, %v149_v23  ;;  %v156_v28 = vld [vmem:[#allocation5 + $0x2a0] sm:$0xff] }
 0x108   :  { %2805 = vmatprep.subr.bf16.mxu0 %v4460_v29  ;;  %2887 = vmatprep.subr.bf16.mxu1 %v4462_v56  ;;  %v164_v29 = vld [vmem:[#allocation5 + $0x2e0] sm:$0xff]  ;;  %v157_v56 = vld [vmem:[#allocation5 + $0x2a8] sm:$0xff] }
 0x109   :  { %v4192_v34 = vcombine.high %v156_v28, %v164_v29  ;;  %v4191_v40 = vcombine.low %v156_v28, %v164_v29  ;;  %v4193_v41 = vcombine.low %v157_v56, %v165_v59  ;;  %v277_v28 = vld [vmem:[#allocation5 + $0x668] sm:$0xff] }
 0x10b   :  { %2806 = vmatpush1.bf16.msra.mxu0 %v4459_v35  ;;  %2888 = vmatpush1.bf16.msra.mxu1 %v4461_v36  ;;  %v4194_v35 = vcombine.high %v157_v56, %v165_v59  ;;  %v172_v36 = vld [vmem:[#allocation5 + $0x320] sm:$0xff] }
 0x10c   :  { %2807 = vmatprep.subr.bf16.mxu0 %v4476_v37  ;;  %2889 = vmatprep.subr.bf16.mxu1 %v4478_v38  ;;  %v180_v37 = vld [vmem:[#allocation5 + $0x360] sm:$0xff]  ;;  %v173_v38 = vld [vmem:[#allocation5 + $0x328] sm:$0xff] }
 0x10d   :  { %v4208_v42 = vcombine.high %v172_v36, %v180_v37  ;;  %v4207_v49 = vcombine.low %v172_v36, %v180_v37  ;;  %v4209_v50 = vcombine.low %v173_v38, %v181_v39  ;;  %v293_v36 = vld [vmem:[#allocation5 + $0x6e8] sm:$0xff] }
 0x10f   :  { %2808 = vmatpush1.bf16.msra.mxu0 %v4475_v43  ;;  %2890 = vmatpush1.bf16.msra.mxu1 %v4477_v44  ;;  %v4210_v43 = vcombine.high %v173_v38, %v181_v39  ;;  %v188_v44 = vld [vmem:[#allocation5 + $0x3a0] sm:$0xff] }
 0x110   :  { %2809 = vmatprep.subr.bf16.mxu0 %v4492_v45  ;;  %2891 = vmatprep.subr.bf16.mxu1 %v4494_v47  ;;  %v196_v45 = vld [vmem:[#allocation5 + $0x3e0] sm:$0xff]  ;;  %v189_v47 = vld [vmem:[#allocation5 + $0x3a8] sm:$0xff] }
 0x111   :  { %v4224_v51 = vcombine.high %v188_v44, %v196_v45  ;;  %v4223_v58 = vcombine.low %v188_v44, %v196_v45  ;;  %v4225_v60 = vcombine.low %v189_v47, %v197_v48  ;;  %v309_v44 = vld [vmem:[#allocation5 + $0x768] sm:$0xff] }
 0x113   :  { %2810 = vmatpush1.bf16.msra.mxu0 %v4491_v52  ;;  %2892 = vmatpush1.bf16.msra.mxu1 %v4493_v53  ;;  %v4226_v52 = vcombine.high %v189_v47, %v197_v48  ;;  %v204_v53 = vld [vmem:[#allocation5 + $0x420] sm:$0xff] }
 0x114   :  { %2916 = vmatprep.subr.bf16.mxu0 %v4112_v54  ;;  %2998 = vmatprep.subr.bf16.mxu1 %v4114_v55  ;;  %v212_v54 = vld [vmem:[#allocation5 + $0x460] sm:$0xff]  ;;  %v205_v55 = vld [vmem:[#allocation5 + $0x428] sm:$0xff] }
 0x115   :  { %v4240_v61 = vcombine.high %v204_v53, %v212_v54  ;;  %v4239_v4 = vcombine.low %v204_v53, %v212_v54  ;;  %v4241_v5 = vcombine.low %v205_v55, %v213_v57  ;;  %v325_v53 = vld [vmem:[#allocation5 + $0x7e8] sm:$0xff] }
 0x116   :  { %2826 = vmatmul.mubr.bf16.vlgmr.msra.gmra.mrb[4].mxu0 %v5338_v33  ;;  %2908 = vmatmul.mubr.bf16.vlgmr.msra.gmra.mrb[4].mxu1 %v5338_v33 }
 0x117   :  { %2917 = vmatpush1.bf16.msra.mxu0 %v4111_v62  ;;  %2999 = vmatpush1.bf16.msra.mxu1 %v4113_v63  ;;  %v4242_v62 = vcombine.high %v205_v55, %v213_v57  ;;  %v220_v63 = vld [vmem:[#allocation5 + $0x4a0] sm:$0xff] }
 0x118   :  { %2918 = vmatprep.subr.bf16.mxu0 %v4128_v0  ;;  %3000 = vmatprep.subr.bf16.mxu1 %v4130_v1  ;;  %v228_v0 = vld [vmem:[#allocation5 + $0x4e0] sm:$0xff]  ;;  %v221_v1 = vld [vmem:[#allocation5 + $0x4a8] sm:$0xff] }
 0x119   :  { %2948 = vmatprep.mubr.bf16.mxu0 %v5318_v3  ;;  %3030 = vmatprep.mubr.bf16.mxu1 %v5318_v3  ;;  %v4256_v6 = vcombine.high %v220_v63, %v228_v0  ;;  %v4255_v12 = vcombine.low %v220_v63, %v228_v0  ;;  %v4257_v13 = vcombine.low %v221_v1, %v229_v2  ;;  %v341_v63 = vld [vmem:[#allocation5 + $0x868] sm:$0xff] }
 0x11b   :  { %2919 = vmatpush1.bf16.msra.mxu0 %v4127_v7  ;;  %3001 = vmatpush1.bf16.msra.mxu1 %v4129_v8  ;;  %v4258_v7 = vcombine.high %v221_v1, %v229_v2  ;;  %v236_v8 = vld [vmem:[#allocation5 + $0x520] sm:$0xff] }
 0x11c   :  { %2920 = vmatprep.subr.bf16.mxu0 %v4144_v9  ;;  %3002 = vmatprep.subr.bf16.mxu1 %v4146_v10  ;;  %v244_v9 = vld [vmem:[#allocation5 + $0x560] sm:$0xff]  ;;  %v237_v10 = vld [vmem:[#allocation5 + $0x528] sm:$0xff] }
 0x11d   :  { %v4272_v14 = vcombine.high %v236_v8, %v244_v9  ;;  %v4271_v20 = vcombine.low %v236_v8, %v244_v9  ;;  %v4273_v22 = vcombine.low %v237_v10, %v245_v11  ;;  %v357_v8 = vld [vmem:[#allocation5 + $0x8e8] sm:$0xff] }
 0x11f   :  { %2921 = vmatpush1.bf16.msra.mxu0 %v4143_v15  ;;  %3003 = vmatpush1.bf16.msra.mxu1 %v4145_v16  ;;  %v4274_v15 = vcombine.high %v237_v10, %v245_v11  ;;  %v252_v16 = vld [vmem:[#allocation5 + $0x5a0] sm:$0xff] }
 0x120   :  { %2922 = vmatprep.subr.bf16.mxu0 %v4160_v17  ;;  %3004 = vmatprep.subr.bf16.mxu1 %v4162_v18  ;;  %v260_v17 = vld [vmem:[#allocation5 + $0x5e0] sm:$0xff]  ;;  %v253_v18 = vld [vmem:[#allocation5 + $0x5a8] sm:$0xff] }
 0x121   :  { %v4288_v23 = vcombine.high %v252_v16, %v260_v17  ;;  %v4287_v29 = vcombine.low %v252_v16, %v260_v17  ;;  %v4289_v56 = vcombine.low %v253_v18, %v261_v19  ;;  %v373_v16 = vld [vmem:[#allocation5 + $0x968] sm:$0xff] }
 0x123   :  { %2923 = vmatpush1.bf16.msra.mxu0 %v4159_v24  ;;  %3005 = vmatpush1.bf16.msra.mxu1 %v4161_v25  ;;  %v4290_v24 = vcombine.high %v253_v18, %v261_v19  ;;  %v268_v25 = vld [vmem:[#allocation5 + $0x620] sm:$0xff] }
 0x124   :  { %2924 = vmatprep.subr.bf16.mxu0 %v4176_v26  ;;  %3006 = vmatprep.subr.bf16.mxu1 %v4178_v27  ;;  %v276_v26 = vld [vmem:[#allocation5 + $0x660] sm:$0xff]  ;;  %v269_v27 = vld [vmem:[#allocation5 + $0x628] sm:$0xff] }
 0x125   :  { %v4304_v59 = vcombine.high %v268_v25, %v276_v26  ;;  %v4303_v37 = vcombine.low %v268_v25, %v276_v26  ;;  %v4305_v38 = vcombine.low %v269_v27, %v277_v28  ;;  %v389_v25 = vld [vmem:[#allocation5 + $0x9e8] sm:$0xff] }
 0x127   :  { %2925 = vmatpush1.bf16.msra.mxu0 %v4175_v31  ;;  %3007 = vmatpush1.bf16.msra.mxu1 %v4177_v32  ;;  %v4306_v31 = vcombine.high %v269_v27, %v277_v28  ;;  %v284_v32 = vld [vmem:[#allocation5 + $0x6a0] sm:$0xff] }
 0x128   :  { %2926 = vmatprep.subr.bf16.mxu0 %v4192_v34  ;;  %3008 = vmatprep.subr.bf16.mxu1 %v4194_v35  ;;  %v292_v34 = vld [vmem:[#allocation5 + $0x6e0] sm:$0xff]  ;;  %v285_v35 = vld [vmem:[#allocation5 + $0x6a8] sm:$0xff] }
 0x129   :  { %v4320_v39 = vcombine.high %v284_v32, %v292_v34  ;;  %v4319_v45 = vcombine.low %v284_v32, %v292_v34  ;;  %v4321_v47 = vcombine.low %v285_v35, %v293_v36  ;;  %v405_v32 = vld [vmem:[#allocation5 + $0xa68] sm:$0xff] }
 0x12b   :  { %2927 = vmatpush1.bf16.msra.mxu0 %v4191_v40  ;;  %3009 = vmatpush1.bf16.msra.mxu1 %v4193_v41  ;;  %v4322_v40 = vcombine.high %v285_v35, %v293_v36  ;;  %v300_v41 = vld [vmem:[#allocation5 + $0x720] sm:$0xff] }
 0x12c   :  { %2928 = vmatprep.subr.bf16.mxu0 %v4208_v42  ;;  %3010 = vmatprep.subr.bf16.mxu1 %v4210_v43  ;;  %v308_v42 = vld [vmem:[#allocation5 + $0x760] sm:$0xff]  ;;  %v301_v43 = vld [vmem:[#allocation5 + $0x728] sm:$0xff] }
 0x12d   :  { %v4336_v48 = vcombine.high %v300_v41, %v308_v42  ;;  %v4335_v54 = vcombine.low %v300_v41, %v308_v42  ;;  %v4337_v55 = vcombine.low %v301_v43, %v309_v44  ;;  %v421_v41 = vld [vmem:[#allocation5 + $0xae8] sm:$0xff] }
 0x12f   :  { %2929 = vmatpush1.bf16.msra.mxu0 %v4207_v49  ;;  %3011 = vmatpush1.bf16.msra.mxu1 %v4209_v50  ;;  %v4338_v49 = vcombine.high %v301_v43, %v309_v44  ;;  %v316_v50 = vld [vmem:[#allocation5 + $0x7a0] sm:$0xff] }
 0x130   :  { %2930 = vmatprep.subr.bf16.mxu0 %v4224_v51  ;;  %3012 = vmatprep.subr.bf16.mxu1 %v4226_v52  ;;  %v324_v51 = vld [vmem:[#allocation5 + $0x7e0] sm:$0xff]  ;;  %v317_v52 = vld [vmem:[#allocation5 + $0x7a8] sm:$0xff] }
 0x131   :  { %v4352_v57 = vcombine.high %v316_v50, %v324_v51  ;;  %v4351_v0 = vcombine.low %v316_v50, %v324_v51  ;;  %v4353_v1 = vcombine.low %v317_v52, %v325_v53  ;;  %v437_v50 = vld [vmem:[#allocation5 + $0xb68] sm:$0xff] }
 0x133   :  { %2931 = vmatpush1.bf16.msra.mxu0 %v4223_v58  ;;  %3013 = vmatpush1.bf16.msra.mxu1 %v4225_v60  ;;  %v4354_v58 = vcombine.high %v317_v52, %v325_v53  ;;  %v332_v60 = vld [vmem:[#allocation5 + $0x820] sm:$0xff] }
 0x134   :  { %2932 = vmatprep.subr.bf16.mxu0 %v4240_v61  ;;  %3014 = vmatprep.subr.bf16.mxu1 %v4242_v62  ;;  %v340_v61 = vld [vmem:[#allocation5 + $0x860] sm:$0xff]  ;;  %v333_v62 = vld [vmem:[#allocation5 + $0x828] sm:$0xff] }
 0x135   :  { %v4368_v2 = vcombine.high %v332_v60, %v340_v61  ;;  %v4367_v9 = vcombine.low %v332_v60, %v340_v61  ;;  %v4369_v10 = vcombine.low %v333_v62, %v341_v63  ;;  %v453_v60 = vld [vmem:[#allocation5 + $0xbe8] sm:$0xff] }
 0x137   :  { %2933 = vmatpush1.bf16.msra.mxu0 %v4239_v4  ;;  %3015 = vmatpush1.bf16.msra.mxu1 %v4241_v5  ;;  %v4370_v4 = vcombine.high %v333_v62, %v341_v63  ;;  %v348_v5 = vld [vmem:[#allocation5 + $0x8a0] sm:$0xff] }
 0x138   :  { %2934 = vmatprep.subr.bf16.mxu0 %v4256_v6  ;;  %3016 = vmatprep.subr.bf16.mxu1 %v4258_v7  ;;  %v356_v6 = vld [vmem:[#allocation5 + $0x8e0] sm:$0xff]  ;;  %v349_v7 = vld [vmem:[#allocation5 + $0x8a8] sm:$0xff] }
 0x139   :  { %v4384_v11 = vcombine.high %v348_v5, %v356_v6  ;;  %v4383_v17 = vcombine.low %v348_v5, %v356_v6  ;;  %v4385_v18 = vcombine.low %v349_v7, %v357_v8  ;;  %v469_v5 = vld [vmem:[#allocation5 + $0xc68] sm:$0xff] }
 0x13b   :  { %2935 = vmatpush1.bf16.msra.mxu0 %v4255_v12  ;;  %3017 = vmatpush1.bf16.msra.mxu1 %v4257_v13  ;;  %v4386_v12 = vcombine.high %v349_v7, %v357_v8  ;;  %v364_v13 = vld [vmem:[#allocation5 + $0x920] sm:$0xff] }
 0x13c   :  { %2936 = vmatprep.subr.bf16.mxu0 %v4272_v14  ;;  %3018 = vmatprep.subr.bf16.mxu1 %v4274_v15  ;;  %v372_v14 = vld [vmem:[#allocation5 + $0x960] sm:$0xff]  ;;  %v365_v15 = vld [vmem:[#allocation5 + $0x928] sm:$0xff] }
 0x13d   :  { %v4400_v19 = vcombine.high %v364_v13, %v372_v14  ;;  %v4399_v26 = vcombine.low %v364_v13, %v372_v14  ;;  %v4401_v27 = vcombine.low %v365_v15, %v373_v16  ;;  %v87_v13 = vld [vmem:[#allocation5 + $0x78] sm:$0xff] }
 0x13f   :  { %2937 = vmatpush1.bf16.msra.mxu0 %v4271_v20  ;;  %3019 = vmatpush1.bf16.msra.mxu1 %v4273_v22  ;;  %v4402_v20 = vcombine.high %v365_v15, %v373_v16  ;;  %v380_v22 = vld [vmem:[#allocation5 + $0x9a0] sm:$0xff] }
 0x140   :  { %2938 = vmatprep.subr.bf16.mxu0 %v4288_v23  ;;  %3020 = vmatprep.subr.bf16.mxu1 %v4290_v24  ;;  %v388_v23 = vld [vmem:[#allocation5 + $0x9e0] sm:$0xff]  ;;  %v381_v24 = vld [vmem:[#allocation5 + $0x9a8] sm:$0xff] }
 0x141   :  { %v4416_v28 = vcombine.high %v380_v22, %v388_v23  ;;  %v4415_v34 = vcombine.low %v380_v22, %v388_v23  ;;  %v4417_v35 = vcombine.low %v381_v24, %v389_v25  ;;  %v103_v22 = vld [vmem:[#allocation5 + $0xf8] sm:$0xff] }
 0x143   :  { %2939 = vmatpush1.bf16.msra.mxu0 %v4287_v29  ;;  %3021 = vmatpush1.bf16.msra.mxu1 %v4289_v56  ;;  %v4418_v29 = vcombine.high %v381_v24, %v389_v25  ;;  %v396_v56 = vld [vmem:[#allocation5 + $0xa20] sm:$0xff] }
 0x144   :  { %2940 = vmatprep.subr.bf16.mxu0 %v4304_v59  ;;  %3022 = vmatprep.subr.bf16.mxu1 %v4306_v31  ;;  %v404_v59 = vld [vmem:[#allocation5 + $0xa60] sm:$0xff]  ;;  %v397_v31 = vld [vmem:[#allocation5 + $0xa28] sm:$0xff] }
 0x145   :  { %v4432_v36 = vcombine.high %v396_v56, %v404_v59  ;;  %v4431_v42 = vcombine.low %v396_v56, %v404_v59  ;;  %v4433_v43 = vcombine.low %v397_v31, %v405_v32  ;;  %v119_v56 = vld [vmem:[#allocation5 + $0x178] sm:$0xff] }
 0x147   :  { %2941 = vmatpush1.bf16.msra.mxu0 %v4303_v37  ;;  %3023 = vmatpush1.bf16.msra.mxu1 %v4305_v38  ;;  %v4434_v37 = vcombine.high %v397_v31, %v405_v32  ;;  %v412_v38 = vld [vmem:[#allocation5 + $0xaa0] sm:$0xff] }
 0x148   :  { %2942 = vmatprep.subr.bf16.mxu0 %v4320_v39  ;;  %3024 = vmatprep.subr.bf16.mxu1 %v4322_v40  ;;  %v420_v39 = vld [vmem:[#allocation5 + $0xae0] sm:$0xff]  ;;  %v413_v40 = vld [vmem:[#allocation5 + $0xaa8] sm:$0xff] }
 0x149   :  { %v4448_v44 = vcombine.high %v412_v38, %v420_v39  ;;  %v4447_v51 = vcombine.low %v412_v38, %v420_v39  ;;  %v4449_v52 = vcombine.low %v413_v40, %v421_v41  ;;  %v135_v38 = vld [vmem:[#allocation5 + $0x1f8] sm:$0xff] }
 0x14b   :  { %2943 = vmatpush1.bf16.msra.mxu0 %v4319_v45  ;;  %3025 = vmatpush1.bf16.msra.mxu1 %v4321_v47  ;;  %v4450_v45 = vcombine.high %v413_v40, %v421_v41  ;;  %v428_v47 = vld [vmem:[#allocation5 + $0xb20] sm:$0xff] }
 0x14c   :  { %2944 = vmatprep.subr.bf16.mxu0 %v4336_v48  ;;  %3026 = vmatprep.subr.bf16.mxu1 %v4338_v49  ;;  %v436_v48 = vld [vmem:[#allocation5 + $0xb60] sm:$0xff]  ;;  %v429_v49 = vld [vmem:[#allocation5 + $0xb28] sm:$0xff] }
 0x14d   :  { %v4464_v53 = vcombine.high %v428_v47, %v436_v48  ;;  %v4463_v61 = vcombine.low %v428_v47, %v436_v48  ;;  %v4465_v62 = vcombine.low %v429_v49, %v437_v50  ;;  %v151_v47 = vld [vmem:[#allocation5 + $0x278] sm:$0xff] }
 0x14f   :  { %2945 = vmatpush1.bf16.msra.mxu0 %v4335_v54  ;;  %3027 = vmatpush1.bf16.msra.mxu1 %v4337_v55  ;;  %v4466_v54 = vcombine.high %v429_v49, %v437_v50  ;;  %v444_v55 = vld [vmem:[#allocation5 + $0xba0] sm:$0xff] }
 0x150   :  { %2946 = vmatprep.subr.bf16.mxu0 %v4352_v57  ;;  %3028 = vmatprep.subr.bf16.mxu1 %v4354_v58  ;;  %v452_v57 = vld [vmem:[#allocation5 + $0xbe0] sm:$0xff]  ;;  %v445_v58 = vld [vmem:[#allocation5 + $0xba8] sm:$0xff] }
 0x151   :  { %v4480_v63 = vcombine.high %v444_v55, %v452_v57  ;;  %v4479_v6 = vcombine.low %v444_v55, %v452_v57  ;;  %v4481_v7 = vcombine.low %v445_v58, %v453_v60  ;;  %v159_v57 = vld [vmem:[#allocation5 + $0x2b8] sm:$0xff] }
 0x153   :  { %2947 = vmatpush1.bf16.msra.mxu0 %v4351_v0  ;;  %3029 = vmatpush1.bf16.msra.mxu1 %v4353_v1  ;;  %v4482_v0 = vcombine.high %v445_v58, %v453_v60  ;;  %v460_v1 = vld [vmem:[#allocation5 + $0xc20] sm:$0xff]  ;;  %v167_v58 = vld [vmem:[#allocation5 + $0x2f8] sm:$0xff] }
 0x154   :  { %2957 = vmatprep.subr.bf16.mxu0 %v4368_v2  ;;  %3039 = vmatprep.subr.bf16.mxu1 %v4370_v4  ;;  %v468_v2 = vld [vmem:[#allocation5 + $0xc60] sm:$0xff]  ;;  %v461_v4 = vld [vmem:[#allocation5 + $0xc28] sm:$0xff] }
 0x155   :  { %v4496_v8 = vcombine.high %v460_v1, %v468_v2  ;;  %v4495_v14 = vcombine.low %v460_v1, %v468_v2  ;;  %v4497_v15 = vcombine.low %v461_v4, %v469_v5 }
 0x156   :  { %2949 = vmatmul.mubr.bf16.vlgmr.msra.gmra.mrb[8].mxu0 %v5324_v21  ;;  %3031 = vmatmul.mubr.bf16.vlgmr.msra.gmra.mrb[8].mxu1 %v5324_v21 }
 0x157   :  { %2958 = vmatpush1.bf16.msra.mxu0 %v4367_v9  ;;  %3040 = vmatpush1.bf16.msra.mxu1 %v4369_v10  ;;  %v4498_v9 = vcombine.high %v461_v4, %v469_v5  ;;  %v78_v10 = vld [vmem:[#allocation5 + $0x30] sm:$0xff]  ;;  %v4198_v5 = vcombine.high %v159_v57, %v167_v58 }
 0x158   :  { %2959 = vmatprep.subr.bf16.mxu0 %v4384_v11  ;;  %3041 = vmatprep.subr.bf16.mxu1 %v4386_v12  ;;  %v86_v11 = vld [vmem:[#allocation5 + $0x70] sm:$0xff]  ;;  %v79_v12 = vld [vmem:[#allocation5 + $0x38] sm:$0xff] }
 0x159   :  { %4507 = vmatprep.mubr.msk.bf16.mxu0 %vm2584_vm0, %v5328_v30  ;;  %4508 = vmatprep.mubr.msk.bf16.mxu1 %vm2584_vm0, %v5328_v30  ;;  %v4116_v16 = vcombine.high %v78_v10, %v86_v11  ;;  %v4115_v23 = vcombine.low %v78_v10, %v86_v11  ;;  %v4117_v24 = vcombine.low %v79_v12, %v87_v13 }
 0x15a   :  { %v4197_v11 = vcombine.low %v159_v57, %v167_v58 }
 0x15b   :  { %2960 = vmatpush1.bf16.msra.mxu0 %v4383_v17  ;;  %3042 = vmatpush1.bf16.msra.mxu1 %v4385_v18  ;;  %v4118_v17 = vcombine.high %v79_v12, %v87_v13  ;;  %v94_v18 = vld [vmem:[#allocation5 + $0xb0] sm:$0xff] }
 0x15c   :  { %2961 = vmatprep.subr.bf16.mxu0 %v4400_v19  ;;  %3043 = vmatprep.subr.bf16.mxu1 %v4402_v20  ;;  %v102_v19 = vld [vmem:[#allocation5 + $0xf0] sm:$0xff]  ;;  %v95_v20 = vld [vmem:[#allocation5 + $0xb8] sm:$0xff] }
 0x15d   :  { %v4132_v25 = vcombine.high %v94_v18, %v102_v19  ;;  %v4131_v59 = vcombine.low %v94_v18, %v102_v19  ;;  %v4133_v31 = vcombine.low %v95_v20, %v103_v22 }
 0x15f   :  { %2962 = vmatpush1.bf16.msra.mxu0 %v4399_v26  ;;  %3044 = vmatpush1.bf16.msra.mxu1 %v4401_v27  ;;  %v4134_v26 = vcombine.high %v95_v20, %v103_v22  ;;  %v110_v27 = vld [vmem:[#allocation5 + $0x130] sm:$0xff] }
 0x160   :  { %2963 = vmatprep.subr.bf16.mxu0 %v4416_v28  ;;  %3045 = vmatprep.subr.bf16.mxu1 %v4418_v29  ;;  %v118_v28 = vld [vmem:[#allocation5 + $0x170] sm:$0xff]  ;;  %v111_v29 = vld [vmem:[#allocation5 + $0x138] sm:$0xff] }
 0x161   :  { %v4148_v32 = vcombine.high %v110_v27, %v118_v28  ;;  %v4147_v39 = vcombine.low %v110_v27, %v118_v28  ;;  %v4149_v40 = vcombine.low %v111_v29, %v119_v56 }
 0x163   :  { %2964 = vmatpush1.bf16.msra.mxu0 %v4415_v34  ;;  %3046 = vmatpush1.bf16.msra.mxu1 %v4417_v35  ;;  %v4150_v34 = vcombine.high %v111_v29, %v119_v56  ;;  %v126_v35 = vld [vmem:[#allocation5 + $0x1b0] sm:$0xff] }
 0x164   :  { %2965 = vmatprep.subr.bf16.mxu0 %v4432_v36  ;;  %3047 = vmatprep.subr.bf16.mxu1 %v4434_v37  ;;  %v134_v36 = vld [vmem:[#allocation5 + $0x1f0] sm:$0xff]  ;;  %v127_v37 = vld [vmem:[#allocation5 + $0x1b8] sm:$0xff] }
 0x165   :  { %v4164_v41 = vcombine.high %v126_v35, %v134_v36  ;;  %v4163_v48 = vcombine.low %v126_v35, %v134_v36  ;;  %v4165_v49 = vcombine.low %v127_v37, %v135_v38 }
 0x167   :  { %2966 = vmatpush1.bf16.msra.mxu0 %v4431_v42  ;;  %3048 = vmatpush1.bf16.msra.mxu1 %v4433_v43  ;;  %v4166_v42 = vcombine.high %v127_v37, %v135_v38  ;;  %v142_v43 = vld [vmem:[#allocation5 + $0x230] sm:$0xff] }
 0x168   :  { %2967 = vmatprep.subr.bf16.mxu0 %v4448_v44  ;;  %3049 = vmatprep.subr.bf16.mxu1 %v4450_v45  ;;  %v150_v44 = vld [vmem:[#allocation5 + $0x270] sm:$0xff]  ;;  %v143_v45 = vld [vmem:[#allocation5 + $0x238] sm:$0xff] }
 0x169   :  { %v4180_v50 = vcombine.high %v142_v43, %v150_v44  ;;  %v4181_v1 = vcombine.low %v143_v45, %v151_v47 }
 0x16b   :  { %2968 = vmatpush1.bf16.msra.mxu0 %v4447_v51  ;;  %3050 = vmatpush1.bf16.msra.mxu1 %v4449_v52  ;;  %v158_v52 = vld [vmem:[#allocation5 + $0x2b0] sm:$0xff] }
 0x16c   :  { %2969 = vmatprep.subr.bf16.mxu0 %v4464_v53  ;;  %3051 = vmatprep.subr.bf16.mxu1 %v4466_v54  ;;  %v166_v53 = vld [vmem:[#allocation5 + $0x2f0] sm:$0xff] }
 0x16d   :  { %v4196_v2 = vcombine.high %v158_v52, %v166_v53  ;;  %v4195_v10 = vcombine.low %v158_v52, %v166_v53 }
 0x16f   :  { %2970 = vmatpush1.bf16.msra.mxu0 %v4463_v61  ;;  %3052 = vmatpush1.bf16.msra.mxu1 %v4465_v62  ;;  %v4179_v62 = vcombine.low %v142_v43, %v150_v44 }
 0x170   :  { %2971 = vmatprep.subr.bf16.mxu0 %v4480_v63  ;;  %3053 = vmatprep.subr.bf16.mxu1 %v4482_v0 }
 0x173   :  { %2972 = vmatpush1.bf16.msra.mxu0 %v4479_v6  ;;  %3054 = vmatpush1.bf16.msra.mxu1 %v4481_v7  ;;  %v174_v6 = vld [vmem:[#allocation5 + $0x330] sm:$0xff] }
 0x174   :  { %2973 = vmatprep.subr.bf16.mxu0 %v4496_v8  ;;  %3055 = vmatprep.subr.bf16.mxu1 %v4498_v9  ;;  %v182_v7 = vld [vmem:[#allocation5 + $0x370] sm:$0xff]  ;;  %v175_v8 = vld [vmem:[#allocation5 + $0x338] sm:$0xff] }
 0x175   :  { %v183_v9 = vld [vmem:[#allocation5 + $0x378] sm:$0xff]  ;;  %v4212_v12 = vcombine.high %v174_v6, %v182_v7  ;;  %v4211_v18 = vcombine.low %v174_v6, %v182_v7  ;;  %v286_v6 = vld [vmem:[#allocation5 + $0x6b0] sm:$0xff] }
 0x176   :  { %v4214_v13 = vcombine.high %v175_v8, %v183_v9  ;;  %v4213_v19 = vcombine.low %v175_v8, %v183_v9  ;;  %v294_v7 = vld [vmem:[#allocation5 + $0x6f0] sm:$0xff]  ;;  %v287_v8 = vld [vmem:[#allocation5 + $0x6b8] sm:$0xff] }
 0x177   :  { %2974 = vmatpush1.bf16.msra.mxu0 %v4495_v14  ;;  %3056 = vmatpush1.bf16.msra.mxu1 %v4497_v15  ;;  %v190_v14 = vld [vmem:[#allocation5 + $0x3b0] sm:$0xff]  ;;  %v295_v9 = vld [vmem:[#allocation5 + $0x6f8] sm:$0xff] }
 0x178   :  { %3080 = vmatprep.subr.bf16.mxu0 %v4116_v16  ;;  %3162 = vmatprep.subr.bf16.mxu1 %v4118_v17  ;;  %v198_v15 = vld [vmem:[#allocation5 + $0x3f0] sm:$0xff]  ;;  %v191_v16 = vld [vmem:[#allocation5 + $0x3b8] sm:$0xff] }
 0x179   :  { %v199_v17 = vld [vmem:[#allocation5 + $0x3f8] sm:$0xff]  ;;  %v4228_v20 = vcombine.high %v190_v14, %v198_v15  ;;  %v4227_v27 = vcombine.low %v190_v14, %v198_v15  ;;  %v302_v14 = vld [vmem:[#allocation5 + $0x730] sm:$0xff] }
 0x17a   :  { %2990 = vmatmul.mubr.bf16.vlgmr.msra.gmra.mrb[8].mxu0 %v5338_v33  ;;  %3072 = vmatmul.mubr.bf16.vlgmr.msra.gmra.mrb[8].mxu1 %v5338_v33  ;;  %v4230_v22 = vcombine.high %v191_v16, %v199_v17  ;;  %v4229_v28 = vcombine.low %v191_v16, %v199_v17  ;;  %v310_v15 = vld [vmem:[#allocation5 + $0x770] sm:$0xff]  ;;  %v303_v16 = vld [vmem:[#allocation5 + $0x738] sm:$0xff] }
 0x17b   :  { %3081 = vmatpush1.bf16.msra.mxu0 %v4115_v23  ;;  %3163 = vmatpush1.bf16.msra.mxu1 %v4117_v24  ;;  %v206_v23 = vld [vmem:[#allocation5 + $0x430] sm:$0xff]  ;;  %v311_v17 = vld [vmem:[#allocation5 + $0x778] sm:$0xff] }
 0x17c   :  { %3082 = vmatprep.subr.bf16.mxu0 %v4132_v25  ;;  %3164 = vmatprep.subr.bf16.mxu1 %v4134_v26  ;;  %v214_v24 = vld [vmem:[#allocation5 + $0x470] sm:$0xff]  ;;  %v207_v25 = vld [vmem:[#allocation5 + $0x438] sm:$0xff] }
 0x17d   :  { %3112 = vmatprep.mubr.bf16.mxu0 %v5318_v3  ;;  %3194 = vmatprep.mubr.bf16.mxu1 %v5318_v3  ;;  %v4182_v3 = vcombine.high %v143_v45, %v151_v47  ;;  %v215_v26 = vld [vmem:[#allocation5 + $0x478] sm:$0xff]  ;;  %v4244_v29 = vcombine.high %v206_v23, %v214_v24  ;;  %v4243_v35 = vcombine.low %v206_v23, %v214_v24  ;;  %v318_v23 = vld [vmem:[#allocation5 + $0x7b0] sm:$0xff] }
 0x17e   :  { %v4246_v56 = vcombine.high %v207_v25, %v215_v26  ;;  %v4245_v36 = vcombine.low %v207_v25, %v215_v26  ;;  %v326_v24 = vld [vmem:[#allocation5 + $0x7f0] sm:$0xff]  ;;  %v319_v25 = vld [vmem:[#allocation5 + $0x7b8] sm:$0xff] }
 0x17f   :  { %3083 = vmatpush1.bf16.msra.mxu0 %v4131_v59  ;;  %3165 = vmatpush1.bf16.msra.mxu1 %v4133_v31  ;;  %v222_v59 = vld [vmem:[#allocation5 + $0x4b0] sm:$0xff]  ;;  %v327_v26 = vld [vmem:[#allocation5 + $0x7f8] sm:$0xff] }
 0x180   :  { %3084 = vmatprep.subr.bf16.mxu0 %v4148_v32  ;;  %3166 = vmatprep.subr.bf16.mxu1 %v4150_v34  ;;  %v230_v31 = vld [vmem:[#allocation5 + $0x4f0] sm:$0xff]  ;;  %v223_v32 = vld [vmem:[#allocation5 + $0x4b8] sm:$0xff] }
 0x181   :  { %v231_v34 = vld [vmem:[#allocation5 + $0x4f8] sm:$0xff]  ;;  %v4260_v37 = vcombine.high %v222_v59, %v230_v31  ;;  %v4259_v43 = vcombine.low %v222_v59, %v230_v31  ;;  %v334_v59 = vld [vmem:[#allocation5 + $0x830] sm:$0xff] }
 0x182   :  { %v4262_v38 = vcombine.high %v223_v32, %v231_v34  ;;  %v4261_v44 = vcombine.low %v223_v32, %v231_v34  ;;  %v342_v31 = vld [vmem:[#allocation5 + $0x870] sm:$0xff]  ;;  %v335_v32 = vld [vmem:[#allocation5 + $0x838] sm:$0xff] }
 0x183   :  { %3085 = vmatpush1.bf16.msra.mxu0 %v4147_v39  ;;  %3167 = vmatpush1.bf16.msra.mxu1 %v4149_v40  ;;  %v238_v39 = vld [vmem:[#allocation5 + $0x530] sm:$0xff]  ;;  %v343_v34 = vld [vmem:[#allocation5 + $0x878] sm:$0xff] }
 0x184   :  { %3086 = vmatprep.subr.bf16.mxu0 %v4164_v41  ;;  %3168 = vmatprep.subr.bf16.mxu1 %v4166_v42  ;;  %v246_v40 = vld [vmem:[#allocation5 + $0x570] sm:$0xff]  ;;  %v239_v41 = vld [vmem:[#allocation5 + $0x538] sm:$0xff] }
 0x185   :  { %v5364_v51 = vpop.f32.mrb[0].mxu0  ;;  %v5366_v54 = vpop.f32.mrb[0].mxu1  ;;  %v247_v42 = vld [vmem:[#allocation5 + $0x578] sm:$0xff]  ;;  %v4276_v45 = vcombine.high %v238_v39, %v246_v40  ;;  %v4275_v52 = vcombine.low %v238_v39, %v246_v40  ;;  %v350_v39 = vld [vmem:[#allocation5 + $0x8b0] sm:$0xff] }
 0x186   :  { %v5368_v55 = vpop.f32.mrb[1].mxu0  ;;  %v5370_v60 = vpop.f32.mrb[1].mxu1  ;;  %v4278_v47 = vcombine.high %v239_v41, %v247_v42  ;;  %v4277_v53 = vcombine.low %v239_v41, %v247_v42  ;;  %v358_v40 = vld [vmem:[#allocation5 + $0x8f0] sm:$0xff]  ;;  %v351_v41 = vld [vmem:[#allocation5 + $0x8b8] sm:$0xff] }
 0x187   :  { %v2667_v61 = vpop.f32.mrb[2].mxu0  ;;  %3087 = vmatpush1.bf16.msra.mxu0 %v4163_v48  ;;  %v2749_v63 = vpop.f32.mrb[2].mxu1  ;;  %3169 = vmatpush1.bf16.msra.mxu1 %v4165_v49  ;;  %v254_v48 = vld [vmem:[#allocation5 + $0x5b0] sm:$0xff]  ;;  %v359_v42 = vld [vmem:[#allocation5 + $0x8f8] sm:$0xff] }
 0x188   :  { %v2668_v0 = vpop.f32.mrb[3].mxu0  ;;  %3088 = vmatprep.subr.bf16.mxu0 %v4180_v50  ;;  %v2750_v4 = vpop.f32.mrb[3].mxu1  ;;  %3170 = vmatprep.subr.bf16.mxu1 %v4182_v3  ;;  %v262_v49 = vld [vmem:[#allocation5 + $0x5f0] sm:$0xff]  ;;  %v255_v50 = vld [vmem:[#allocation5 + $0x5b8] sm:$0xff] }
 0x189   :  { %v263_v3 = vld [vmem:[#allocation5 + $0x5f8] sm:$0xff]  ;;  %v4292_v57 = vcombine.high %v254_v48, %v262_v49  ;;  %v270_v61 = vld [vmem:[#allocation5 + $0x630] sm:$0xff] }
 0x18a   :  { %v4294_v58 = vcombine.high %v255_v50, %v263_v3  ;;  %v271_v63 = vld [vmem:[#allocation5 + $0x638] sm:$0xff] }
 0x18b   :  { %3089 = vmatpush1.bf16.msra.mxu0 %v4179_v62  ;;  %3171 = vmatpush1.bf16.msra.mxu1 %v4181_v1  ;;  %v278_v62 = vld [vmem:[#allocation5 + $0x670] sm:$0xff]  ;;  %v279_v0 = vld [vmem:[#allocation5 + $0x678] sm:$0xff]  ;;  %v4291_v1 = vcombine.low %v254_v48, %v262_v49 }
 0x18c   :  { %3090 = vmatprep.subr.bf16.mxu0 %v4196_v2  ;;  %3172 = vmatprep.subr.bf16.mxu1 %v4198_v5  ;;  %v4293_v2 = vcombine.low %v255_v50, %v263_v3  ;;  %v4308_v4 = vcombine.high %v270_v61, %v278_v62  ;;  %v4310_v5 = vcombine.high %v271_v63, %v279_v0  ;;  %v366_v48 = vld [vmem:[#allocation5 + $0x930] sm:$0xff]  ;;  %v367_v50 = vld [vmem:[#allocation5 + $0x938] sm:$0xff] }
 0x18d   :  { %v374_v49 = vld [vmem:[#allocation5 + $0x970] sm:$0xff]  ;;  %v375_v3 = vld [vmem:[#allocation5 + $0x978] sm:$0xff] }
 0x18f   :  { %3091 = vmatpush1.bf16.msra.mxu0 %v4195_v10  ;;  %3173 = vmatpush1.bf16.msra.mxu1 %v4197_v11  ;;  %v4307_v10 = vcombine.low %v270_v61, %v278_v62  ;;  %v4309_v11 = vcombine.low %v271_v63, %v279_v0  ;;  %v382_v61 = vld [vmem:[#allocation5 + $0x9b0] sm:$0xff]  ;;  %v383_v63 = vld [vmem:[#allocation5 + $0x9b8] sm:$0xff] }
 0x190   :  { %3092 = vmatprep.subr.bf16.mxu0 %v4212_v12  ;;  %3174 = vmatprep.subr.bf16.mxu1 %v4214_v13  ;;  %v4324_v12 = vcombine.high %v286_v6, %v294_v7  ;;  %v4326_v13 = vcombine.high %v287_v8, %v295_v9  ;;  %v390_v62 = vld [vmem:[#allocation5 + $0x9f0] sm:$0xff]  ;;  %v391_v0 = vld [vmem:[#allocation5 + $0x9f8] sm:$0xff] }
 0x193   :  { %3093 = vmatpush1.bf16.msra.mxu0 %v4211_v18  ;;  %3175 = vmatpush1.bf16.msra.mxu1 %v4213_v19  ;;  %v4323_v18 = vcombine.low %v286_v6, %v294_v7  ;;  %v4325_v19 = vcombine.low %v287_v8, %v295_v9  ;;  %v406_v6 = vld [vmem:[#allocation5 + $0xa70] sm:$0xff]  ;;  %v399_v7 = vld [vmem:[#allocation5 + $0xa38] sm:$0xff]  ;;  %v4419_v9 = vcombine.low %v382_v61, %v390_v62 }
 0x194   :  { %3094 = vmatprep.subr.bf16.mxu0 %v4228_v20  ;;  %3176 = vmatprep.subr.bf16.mxu1 %v4230_v22  ;;  %v4340_v20 = vcombine.high %v302_v14, %v310_v15  ;;  %v4342_v22 = vcombine.high %v303_v16, %v311_v17  ;;  %v407_v8 = vld [vmem:[#allocation5 + $0xa78] sm:$0xff] }
 0x197   :  { %3095 = vmatpush1.bf16.msra.mxu0 %v4227_v27  ;;  %3177 = vmatpush1.bf16.msra.mxu1 %v4229_v28  ;;  %v4339_v27 = vcombine.low %v302_v14, %v310_v15  ;;  %v4341_v28 = vcombine.low %v303_v16, %v311_v17  ;;  %v415_v14 = vld [vmem:[#allocation5 + $0xab8] sm:$0xff]  ;;  %v4437_v17 = vcombine.low %v399_v7, %v407_v8 }
 0x198   :  { %3096 = vmatprep.subr.bf16.mxu0 %v4244_v29  ;;  %3178 = vmatprep.subr.bf16.mxu1 %v4246_v56  ;;  %v4356_v29 = vcombine.high %v318_v23, %v326_v24  ;;  %v4358_v56 = vcombine.high %v319_v25, %v327_v26  ;;  %v423_v15 = vld [vmem:[#allocation5 + $0xaf8] sm:$0xff] }
 0x19b   :  { %3097 = vmatpush1.bf16.msra.mxu0 %v4243_v35  ;;  %3179 = vmatpush1.bf16.msra.mxu1 %v4245_v36  ;;  %v4355_v35 = vcombine.low %v318_v23, %v326_v24  ;;  %v4357_v36 = vcombine.low %v319_v25, %v327_v26  ;;  %v431_v23 = vld [vmem:[#allocation5 + $0xb38] sm:$0xff]  ;;  %v4453_v26 = vcombine.low %v415_v14, %v423_v15 }
 0x19c   :  { %3098 = vmatprep.subr.bf16.mxu0 %v4260_v37  ;;  %3180 = vmatprep.subr.bf16.mxu1 %v4262_v38  ;;  %v4372_v37 = vcombine.high %v334_v59, %v342_v31  ;;  %v4374_v38 = vcombine.high %v335_v32, %v343_v34  ;;  %v439_v24 = vld [vmem:[#allocation5 + $0xb78] sm:$0xff] }
 0x19f   :  { %3099 = vmatpush1.bf16.msra.mxu0 %v4259_v43  ;;  %3181 = vmatpush1.bf16.msra.mxu1 %v4261_v44  ;;  %v4371_v43 = vcombine.low %v334_v59, %v342_v31  ;;  %v4373_v44 = vcombine.low %v335_v32, %v343_v34  ;;  %v447_v59 = vld [vmem:[#allocation5 + $0xbb8] sm:$0xff]  ;;  %v4469_v34 = vcombine.low %v431_v23, %v439_v24 }
 0x1a0   :  { %3100 = vmatprep.subr.bf16.mxu0 %v4276_v45  ;;  %3182 = vmatprep.subr.bf16.mxu1 %v4278_v47  ;;  %v4388_v45 = vcombine.high %v350_v39, %v358_v40  ;;  %v4390_v47 = vcombine.high %v351_v41, %v359_v42  ;;  %v455_v31 = vld [vmem:[#allocation5 + $0xbf8] sm:$0xff] }
 0x1a3   :  { %3101 = vmatpush1.bf16.msra.mxu0 %v4275_v52  ;;  %3183 = vmatpush1.bf16.msra.mxu1 %v4277_v53  ;;  %v4387_v52 = vcombine.low %v350_v39, %v358_v40  ;;  %v4389_v53 = vcombine.low %v351_v41, %v359_v42  ;;  %v482_v39 = vsub.s32 1, %v5308_v46  ;;  %v463_v40 = vld [vmem:[#allocation5 + $0xc38] sm:$0xff]  ;;  %v5379_v42 = vld [vmem:[#allocation7] sm:$0xff] }
 0x1a4   :  { %3102 = vmatprep.subr.bf16.mxu0 %v4292_v57  ;;  %3184 = vmatprep.subr.bf16.mxu1 %v4294_v58  ;;  %v4404_v57 = vcombine.high %v366_v48, %v374_v49  ;;  %v4406_v58 = vcombine.high %v367_v50, %v375_v3  ;;  %v471_v41 = vld [vmem:[#allocation5 + $0xc78] sm:$0xff] }
 0x1a7   :  { %3103 = vmatpush1.bf16.msra.mxu0 %v4291_v1  ;;  %3185 = vmatpush1.bf16.msra.mxu1 %v4293_v2  ;;  %v4403_v1 = vcombine.low %v366_v48, %v374_v49  ;;  %v4420_v2 = vcombine.high %v382_v61, %v390_v62  ;;  %v4502_v48 = vcombine.high %v463_v40, %v471_v41  ;;  %v3276_v49 = vld [vmem:[%s6239_s3 + $0x80] sm:$0xff] }
 0x1a8   :  { %3104 = vmatprep.subr.bf16.mxu0 %v4308_v4  ;;  %3186 = vmatprep.subr.bf16.mxu1 %v4310_v5  ;;  %v4422_v4 = vcombine.high %v383_v63, %v391_v0  ;;  %v398_v5 = vld [vmem:[#allocation5 + $0xa30] sm:$0xff]  ;;  %v4501_v61 = vcombine.low %v463_v40, %v471_v41 }
 0x1a9   :  { %v4435_v16 = vcombine.low %v398_v5, %v406_v6  ;;  %v3299_v41 = vld [vmem:[%s6239_s3 + $0x138] sm:$0xff] }
 0x1ab   :  { %3105 = vmatpush1.bf16.msra.mxu0 %v4307_v10  ;;  %3187 = vmatpush1.bf16.msra.mxu1 %v4309_v11  ;;  %v4421_v10 = vcombine.low %v383_v63, %v391_v0  ;;  %v4436_v11 = vcombine.high %v398_v5, %v406_v6  ;;  %v3260_v63 = vld [vmem:[%s6239_s3] sm:$0xff]  ;;  %v3261_v0 = vld [vmem:[%s6239_s3 + $0x8] sm:$0xff]  ;;  %v3278_v5 = vld [vmem:[%s6239_s3 + $0x90] sm:$0xff] }
 0x1ac   :  { %3106 = vmatprep.subr.bf16.mxu0 %v4324_v12  ;;  %3188 = vmatprep.subr.bf16.mxu1 %v4326_v13  ;;  %v414_v12 = vld [vmem:[#allocation5 + $0xab0] sm:$0xff] }
 0x1ad   :  { %v422_v13 = vld [vmem:[#allocation5 + $0xaf0] sm:$0xff] }
 0x1ae   :  { %v4451_v25 = vcombine.low %v414_v12, %v422_v13  ;;  %v3279_v6 = vld [vmem:[%s6239_s3 + $0x98] sm:$0xff] }
 0x1af   :  { %3107 = vmatpush1.bf16.msra.mxu0 %v4323_v18  ;;  %3189 = vmatpush1.bf16.msra.mxu1 %v4325_v19  ;;  %v4452_v18 = vcombine.high %v414_v12, %v422_v13  ;;  %v4454_v19 = vcombine.high %v415_v14, %v423_v15  ;;  %v4796_v12 = vpack.c.bf16 %v3279_v6, %v3278_v5  ;;  %v3295_v13 = vld [vmem:[%s6239_s3 + $0x118] sm:$0xff]  ;;  %v3280_v14 = vld [vmem:[%s6239_s3 + $0xa0] sm:$0xff]  ;;  %v3281_v15 = vld [vmem:[%s6239_s3 + $0xa8] sm:$0xff] }
 0x1b0   :  { %3108 = vmatprep.subr.bf16.mxu0 %v4340_v20  ;;  %3190 = vmatprep.subr.bf16.mxu1 %v4342_v22  ;;  %v430_v20 = vld [vmem:[#allocation5 + $0xb30] sm:$0xff] }
 0x1b1   :  { %v438_v22 = vld [vmem:[#allocation5 + $0xb70] sm:$0xff] }
 0x1b2   :  { %v4467_v32 = vcombine.low %v430_v20, %v438_v22 }
 0x1b3   :  { %3109 = vmatpush1.bf16.msra.mxu0 %v4339_v27  ;;  %3191 = vmatpush1.bf16.msra.mxu1 %v4341_v28  ;;  %v4468_v27 = vcombine.high %v430_v20, %v438_v22  ;;  %v4470_v28 = vcombine.high %v431_v23, %v439_v24  ;;  %v4800_v24 = vpack.c.bf16 %v3281_v15, %v3280_v14  ;;  %v3303_v14 = vld [vmem:[%s6239_s3 + $0x158] sm:$0xff]  ;;  %v3288_v15 = vld [vmem:[%s6239_s3 + $0xe0] sm:$0xff] }
 0x1b4   :  { %3110 = vmatprep.subr.bf16.mxu0 %v4356_v29  ;;  %3192 = vmatprep.subr.bf16.mxu1 %v4358_v56  ;;  %v446_v29 = vld [vmem:[#allocation5 + $0xbb0] sm:$0xff] }
 0x1b5   :  { %v454_v56 = vld [vmem:[#allocation5 + $0xbf0] sm:$0xff] }
 0x1b7   :  { %3111 = vmatpush1.bf16.msra.mxu0 %v4355_v35  ;;  %3193 = vmatpush1.bf16.msra.mxu1 %v4357_v36  ;;  %v4484_v35 = vcombine.high %v446_v29, %v454_v56  ;;  %v4486_v36 = vcombine.high %v447_v59, %v455_v31 }
 0x1b8   :  { %3121 = vmatprep.subr.bf16.mxu0 %v4372_v37  ;;  %3203 = vmatprep.subr.bf16.mxu1 %v4374_v38  ;;  %v462_v37 = vld [vmem:[#allocation5 + $0xc30] sm:$0xff] }
 0x1b9   :  { %v470_v38 = vld [vmem:[#allocation5 + $0xc70] sm:$0xff] }
 0x1ba   :  { %3113 = vmatmul.mubr.bf16.vlgmr.msra.gmra.mrb[12].mxu0 %v5324_v21  ;;  %3195 = vmatmul.mubr.bf16.vlgmr.msra.gmra.mrb[12].mxu1 %v5324_v21  ;;  %v4405_v21 = vcombine.low %v367_v50, %v375_v3  ;;  %v3277_v50 = vld [vmem:[%s6239_s3 + $0x88] sm:$0xff]  ;;  %v483_v3 = vrot.slane %v5379_v42, %v482_v39 }
 0x1bb   :  { %3122 = vmatpush1.bf16.msra.mxu0 %v4371_v43  ;;  %3204 = vmatpush1.bf16.msra.mxu1 %v4373_v44  ;;  %v490_v43 = vsub.s32 3, %v5308_v46  ;;  %v4483_v44 = vcombine.low %v446_v29, %v454_v56  ;;  %v4792_v62 = vpack.c.bf16 %v3277_v50, %v3276_v49  ;;  %v3282_v29 = vld [vmem:[%s6239_s3 + $0xb0] sm:$0xff]  ;;  %v3283_v56 = vld [vmem:[%s6239_s3 + $0xb8] sm:$0xff] }
 0x1bc   :  { %3123 = vmatprep.subr.bf16.mxu0 %v4388_v45  ;;  %3205 = vmatprep.subr.bf16.mxu1 %v4390_v47  ;;  %v4485_v45 = vcombine.low %v447_v59, %v455_v31  ;;  %v4500_v47 = vcombine.high %v462_v37, %v470_v38  ;;  %v3314_v59 = vld [vmem:[%s6239_s3 + $0x1b0] sm:$0xff]  ;;  %v3315_v31 = vld [vmem:[%s6239_s3 + $0x1b8] sm:$0xff] }
 0x1bd   :  { %4509 = vmatprep.mubr.msk.bf16.mxu0 %vm2584_vm0, %v5328_v30  ;;  %4510 = vmatprep.mubr.msk.bf16.mxu1 %vm2584_vm0, %v5328_v30  ;;  %v4438_v30 = vcombine.high %v399_v7, %v407_v8  ;;  %v4794_v8 = vpack.c.bf16 %v3261_v0, %v3260_v63  ;;  %v4836_v40 = vpack.c.bf16 %v3315_v31, %v3314_v59  ;;  %v3286_v63 = vld [vmem:[%s6239_s3 + $0xd0] sm:$0xff]  ;;  %v3287_v0 = vld [vmem:[%s6239_s3 + $0xd8] sm:$0xff]  ;;  %v498_v59 = vsub.s32 5, %v5308_v46 }
 0x1be   :  { %v3322_v31 = vld [vmem:[%s6239_s3 + $0x1f0] sm:$0xff] }
 0x1bf   :  { %3124 = vmatpush1.bf16.msra.mxu0 %v4387_v52  ;;  %3206 = vmatpush1.bf16.msra.mxu1 %v4389_v53  ;;  %v3308_v52 = vld [vmem:[%s6239_s3 + $0x180] sm:$0xff]  ;;  %v3309_v53 = vld [vmem:[%s6239_s3 + $0x188] sm:$0xff] }
 0x1c0   :  { %3125 = vmatprep.subr.bf16.mxu0 %v4404_v57  ;;  %3207 = vmatprep.subr.bf16.mxu1 %v4406_v58  ;;  %v491_v57 = vrot.slane %v5379_v42, %v490_v43  ;;  %v4499_v58 = vcombine.low %v462_v37, %v470_v38  ;;  %v3267_v37 = vld [vmem:[%s6239_s3 + $0x38] sm:$0xff]  ;;  %v3298_v38 = vld [vmem:[%s6239_s3 + $0x130] sm:$0xff] }
 0x1c1   :  { %v4838_v50 = vpack.c.bf16 %v3299_v41, %v3298_v38  ;;  %v3275_v41 = vld [vmem:[%s6239_s3 + $0x78] sm:$0xff] }
 0x1c2   :  { %v5051_v7 = vadd.f32 %v5370_v60, %v491_v57  ;;  %v3263_v60 = vld [vmem:[%s6239_s3 + $0x18] sm:$0xff]  ;;  %v3300_v57 = vld [vmem:[%s6239_s3 + $0x140] sm:$0xff] }
 0x1c3   :  { %3126 = vmatpush1.bf16.msra.mxu0 %v4403_v1  ;;  %3208 = vmatpush1.bf16.msra.mxu1 %v4405_v21  ;;  %v4824_v1 = vpack.c.bf16 %v3309_v53, %v3308_v52  ;;  %v3292_v21 = vld [vmem:[%s6239_s3 + $0x100] sm:$0xff]  ;;  %v3269_v53 = vld [vmem:[%s6239_s3 + $0x48] sm:$0xff] }
 0x1c4   :  { %3127 = vmatprep.subr.bf16.mxu0 %v4420_v2  ;;  %3209 = vmatprep.subr.bf16.mxu1 %v4422_v4  ;;  %v3293_v2 = vld [vmem:[%s6239_s3 + $0x108] sm:$0xff]  ;;  %v5049_v4 = vadd.f32 %v5368_v55, %v483_v3  ;;  %v3311_v55 = vld [vmem:[%s6239_s3 + $0x198] sm:$0xff]  ;;  %v3247_v20 = vmax.f32 %v5051_v7, 0.0  ;;  %v3268_v52 = vld [vmem:[%s6239_s3 + $0x40] sm:$0xff] }
 0x1c5   :  { %v4810_v7 = vpack.c.bf16 %v3269_v53, %v3268_v52  ;;  %v3372_v52 = vld [vmem:[%s6239_s3 + $0x380] sm:$0xff]  ;;  %v3373_v53 = vld [vmem:[%s6239_s3 + $0x388] sm:$0xff] }
 0x1c7   :  { %3128 = vmatpush1.bf16.msra.mxu0 %v4419_v9  ;;  %3210 = vmatpush1.bf16.msra.mxu1 %v4421_v10  ;;  %v3310_v9 = vld [vmem:[%s6239_s3 + $0x190] sm:$0xff]  ;;  %v4826_v10 = vpack.c.bf16 %v3293_v2, %v3292_v21 }
 0x1c8   :  { %3129 = vmatprep.subr.bf16.mxu0 %v4436_v11  ;;  %3211 = vmatprep.subr.bf16.mxu1 %v4438_v30  ;;  %v3262_v11 = vld [vmem:[%s6239_s3 + $0x10] sm:$0xff] }
 0x1c9   :  { %v3294_v30 = vld [vmem:[%s6239_s3 + $0x110] sm:$0xff]  ;;  %v4798_v22 = vpack.c.bf16 %v3263_v60, %v3262_v11  ;;  %v3271_v60 = vld [vmem:[%s6239_s3 + $0x58] sm:$0xff] }
 0x1ca   :  { %v4830_v23 = vpack.c.bf16 %v3295_v13, %v3294_v30  ;;  %v3318_v2 = vld [vmem:[%s6239_s3 + $0x1d0] sm:$0xff] }
 0x1cb   :  { %3130 = vmatpush1.bf16.msra.mxu0 %v4435_v16  ;;  %3212 = vmatpush1.bf16.msra.mxu1 %v4437_v17  ;;  %v3245_v16 = vmax.f32 %v5049_v4, 0.0  ;;  %v4828_v17 = vpack.c.bf16 %v3311_v55, %v3310_v9  ;;  %v3319_v4 = vld [vmem:[%s6239_s3 + $0x1d8] sm:$0xff]  ;;  %v3270_v11 = vld [vmem:[%s6239_s3 + $0x50] sm:$0xff] }
 0x1cc   :  { %3131 = vmatprep.subr.bf16.mxu0 %v4452_v18  ;;  %3213 = vmatprep.subr.bf16.mxu1 %v4454_v19  ;;  %v3312_v18 = vld [vmem:[%s6239_s3 + $0x1a0] sm:$0xff]  ;;  %v3313_v19 = vld [vmem:[%s6239_s3 + $0x1a8] sm:$0xff]  ;;  %v3302_v30 = vld [vmem:[%s6239_s3 + $0x150] sm:$0xff]  ;;  %v4844_v13 = vpack.c.bf16 %v3319_v4, %v3318_v2 }
 0x1cd   :  { %v3324_v2 = vld [vmem:[%s6239_s3 + $0x200] sm:$0xff]  ;;  %v3325_v4 = vld [vmem:[%s6239_s3 + $0x208] sm:$0xff] }
 0x1cf   :  { %3132 = vmatpush1.bf16.msra.mxu0 %v4451_v25  ;;  %3214 = vmatpush1.bf16.msra.mxu1 %v4453_v26  ;;  %v3264_v25 = vld [vmem:[%s6239_s3 + $0x20] sm:$0xff]  ;;  %v3265_v26 = vld [vmem:[%s6239_s3 + $0x28] sm:$0xff] }
 0x1d0   :  { %3133 = vmatprep.subr.bf16.mxu0 %v4468_v27  ;;  %3215 = vmatprep.subr.bf16.mxu1 %v4470_v28  ;;  %v3296_v27 = vld [vmem:[%s6239_s3 + $0x120] sm:$0xff]  ;;  %v3297_v28 = vld [vmem:[%s6239_s3 + $0x128] sm:$0xff] }
 0x1d3   :  { %3134 = vmatpush1.bf16.msra.mxu0 %v4467_v32  ;;  %3216 = vmatpush1.bf16.msra.mxu1 %v4469_v34  ;;  %v4802_v32 = vpack.c.bf16 %v3265_v26, %v3264_v25  ;;  %v4834_v34 = vpack.c.bf16 %v3297_v28, %v3296_v27  ;;  %v3273_v25 = vld [vmem:[%s6239_s3 + $0x68] sm:$0xff]  ;;  %v3304_v26 = vld [vmem:[%s6239_s3 + $0x160] sm:$0xff]  ;;  %v486_v27 = vsub.s32 2, %v5308_v46 }
 0x1d4   :  { %3135 = vmatprep.subr.bf16.mxu0 %v4484_v35  ;;  %3217 = vmatprep.subr.bf16.mxu1 %v4486_v36  ;;  %v4804_v35 = vpack.c.bf16 %v3283_v56, %v3282_v29  ;;  %v3266_v36 = vld [vmem:[%s6239_s3 + $0x30] sm:$0xff]  ;;  %v3305_v28 = vld [vmem:[%s6239_s3 + $0x168] sm:$0xff]  ;;  %v3291_v56 = vld [vmem:[%s6239_s3 + $0xf8] sm:$0xff] }
 0x1d5   :  { %v4806_v49 = vpack.c.bf16 %v3267_v37, %v3266_v36  ;;  %v3290_v29 = vld [vmem:[%s6239_s3 + $0xf0] sm:$0xff]  ;;  %v4850_v37 = vpack.c.bf16 %v3305_v28, %v3304_v26 }
 0x1d6   :  { %v4820_v38 = vpack.c.bf16 %v3291_v56, %v3290_v29  ;;  %v3328_v56 = vld [vmem:[%s6239_s3 + $0x220] sm:$0xff] }
 0x1d7   :  { %3136 = vmatpush1.bf16.msra.mxu0 %v4483_v44  ;;  %3218 = vmatpush1.bf16.msra.mxu1 %v4485_v45  ;;  %v3284_v44 = vld [vmem:[%s6239_s3 + $0xc0] sm:$0xff]  ;;  %v3285_v45 = vld [vmem:[%s6239_s3 + $0xc8] sm:$0xff] }
 0x1d8   :  { %3137 = vmatprep.subr.bf16.mxu0 %v4500_v47  ;;  %3219 = vmatprep.subr.bf16.mxu1 %v4502_v48  ;;  %v3316_v47 = vld [vmem:[%s6239_s3 + $0x1c0] sm:$0xff]  ;;  %v3317_v48 = vld [vmem:[%s6239_s3 + $0x1c8] sm:$0xff]  ;;  %v4808_v3 = vpack.c.bf16 %v3285_v45, %v3284_v44  ;;  %v3306_v44 = vld [vmem:[%s6239_s3 + $0x170] sm:$0xff]  ;;  %v487_v45 = vrot.slane %v5379_v42, %v486_v27 }
 0x1db   :  { %3138 = vmatpush1.bf16.msra.mxu0 %v4499_v58  ;;  %3220 = vmatpush1.bf16.msra.mxu1 %v4501_v61  ;;  %v4840_v61 = vpack.c.bf16 %v3317_v48, %v3316_v47  ;;  %v3307_v48 = vld [vmem:[%s6239_s3 + $0x178] sm:$0xff] }
 0x1dc   :  { %4793 = vmatprep.subr.bf16.mxu0 %v4792_v62  ;;  %4825 = vmatprep.subr.bf16.mxu1 %v4824_v1  ;;  %v3301_v62 = vld [vmem:[%s6239_s3 + $0x148] sm:$0xff] }
 0x1dd   :  { %v4842_v55 = vpack.c.bf16 %v3301_v62, %v3300_v57 }
 0x1de   :  { %3154 = vmatmul.mubr.bf16.vlgmr.msra.gmra.mrb[12].mxu0 %v5338_v33  ;;  %3236 = vmatmul.mubr.bf16.vlgmr.msra.gmra.mrb[12].mxu1 %v5338_v33  ;;  %v4832_v33 = vpack.c.bf16 %v3313_v19, %v3312_v18  ;;  %v3321_v18 = vld [vmem:[%s6239_s3 + $0x1e8] sm:$0xff]  ;;  %v4814_v19 = vpack.c.bf16 %v3271_v60, %v3270_v11  ;;  %v4858_v11 = vpack.c.bf16 %v3325_v4, %v3324_v2  ;;  %v3374_v60 = vld [vmem:[%s6239_s3 + $0x390] sm:$0xff]  ;;  %v3332_v4 = vld [vmem:[%s6239_s3 + $0x240] sm:$0xff] }
 0x1df   :  { %4795 = vmatpush3.bf16.msra.mxu0 %v4794_v8  ;;  %3587 = vmatprep.mubr.f32.mxu0 %v3245_v16  ;;  %v3289_v16 = vld [vmem:[%s6239_s3 + $0xe8] sm:$0xff] }
 0x1e0   :  { %4827 = vmatpush3.bf16.msra.mxu1 %v4826_v10  ;;  %3657 = vmatprep.mubr.f32.mxu1 %v3247_v20  ;;  %v4812_v10 = vpack.c.bf16 %v3287_v0, %v3286_v63  ;;  %v478_v20 = vsub.s32 0, %v5308_v46  ;;  %v4854_v63 = vpack.c.bf16 %v3307_v48, %v3306_v44  ;;  %v3330_v48 = vld [vmem:[%s6239_s3 + $0x230] sm:$0xff] }
 0x1e1   :  { %4797 = vmatprep.subr.bf16.mxu0 %v4796_v12  ;;  %4829 = vmatprep.subr.bf16.mxu1 %v4828_v17  ;;  %v3320_v17 = vld [vmem:[%s6239_s3 + $0x1e0] sm:$0xff] }
 0x1e2   :  { %v479_v36 = vrot.slane %v5379_v42, %v478_v20 }
 0x1e3   :  { %4799 = vmatpush3.bf16.msra.mxu0 %v4798_v22  ;;  %v4846_v22 = vpack.c.bf16 %v3303_v14, %v3302_v30  ;;  %v3358_v14 = vld [vmem:[%s6239_s3 + $0x310] sm:$0xff] }
 0x1e4   :  { %4831 = vmatpush3.bf16.msra.mxu1 %v4830_v23  ;;  %4801 = vmatprep.subr.bf16.mxu0 %v4800_v24  ;;  %v4816_v23 = vpack.c.bf16 %v3289_v16, %v3288_v15  ;;  %v3272_v24 = vld [vmem:[%s6239_s3 + $0x60] sm:$0xff]  ;;  %v5048_v62 = vadd.f32 %v5364_v51, %v479_v36  ;;  %v3361_v36 = vld [vmem:[%s6239_s3 + $0x328] sm:$0xff] }
 0x1e5   :  { %4833 = vmatprep.subr.bf16.mxu1 %v4832_v33  ;;  %v4848_v33 = vpack.c.bf16 %v3321_v18, %v3320_v17  ;;  %v3356_v51 = vld [vmem:[%s6239_s3 + $0x300] sm:$0xff]  ;;  %v3359_v17 = vld [vmem:[%s6239_s3 + $0x318] sm:$0xff] }
 0x1e6   :  { %v3244_v30 = vmax.f32 %v5048_v62, 0.0  ;;  %v3344_v18 = vld [vmem:[%s6239_s3 + $0x2a0] sm:$0xff]  ;;  %v4894_v28 = vpack.c.bf16 %v3359_v17, %v3358_v14  ;;  %v3381_v62 = vld [vmem:[%s6239_s3 + $0x3c8] sm:$0xff]  ;;  %v3367_v14 = vld [vmem:[%s6239_s3 + $0x358] sm:$0xff] }
 0x1e7   :  { %4803 = vmatpush3.bf16.msra.mxu0 %v4802_v32  ;;  %v3323_v32 = vld [vmem:[%s6239_s3 + $0x1f8] sm:$0xff]  ;;  %v3384_v17 = vld [vmem:[%s6239_s3 + $0x3e0] sm:$0xff] }
 0x1e8   :  { %4835 = vmatpush3.bf16.msra.mxu1 %v4834_v34  ;;  %4805 = vmatprep.subr.bf16.mxu0 %v4804_v35  ;;  %v506_v34 = vsub.s32 7, %v5308_v46  ;;  %v4818_v35 = vpack.c.bf16 %v3273_v25, %v3272_v24  ;;  %v4852_v47 = vpack.c.bf16 %v3323_v32, %v3322_v31  ;;  %v3376_v24 = vld [vmem:[%s6239_s3 + $0x3a0] sm:$0xff]  ;;  %v3377_v25 = vld [vmem:[%s6239_s3 + $0x3a8] sm:$0xff] }
 0x1e9   :  { %v5509_v58 = vpop.f32.mrb[4].mxu0  ;;  %4837 = vmatprep.subr.bf16.mxu1 %v4836_v40  ;;  %v5520_v1 = vpop.f32.mrb[4].mxu1  ;;  %v3274_v40 = vld [vmem:[%s6239_s3 + $0x70] sm:$0xff]  ;;  %v3329_v31 = vld [vmem:[%s6239_s3 + $0x228] sm:$0xff]  ;;  %v3360_v32 = vld [vmem:[%s6239_s3 + $0x320] sm:$0xff] }
 0x1ea   :  { %v5522_v21 = vpop.f32.mrb[5].mxu0  ;;  %v5530_v5 = vpop.f32.mrb[5].mxu1  ;;  %v507_v57 = vrot.slane %v5379_v42, %v506_v34  ;;  %v4866_v44 = vpack.c.bf16 %v3329_v31, %v3328_v56  ;;  %v3369_v56 = vld [vmem:[%s6239_s3 + $0x368] sm:$0xff]  ;;  %v3354_v31 = vld [vmem:[%s6239_s3 + $0x2f0] sm:$0xff] }
 0x1eb   :  { %v2831_v6 = vpop.f32.mrb[6].mxu0  ;;  %4807 = vmatpush3.bf16.msra.mxu0 %v4806_v49  ;;  %v2913_v8 = vpop.f32.mrb[6].mxu1  ;;  %v3340_v49 = vld [vmem:[%s6239_s3 + $0x280] sm:$0xff] }
 0x1ec   :  { %4839 = vmatpush3.bf16.msra.mxu1 %v4838_v50  ;;  %v2832_v9 = vpop.f32.mrb[7].mxu0  ;;  %4809 = vmatprep.subr.bf16.mxu0 %v4808_v3  ;;  %v2914_v12 = vpop.f32.mrb[7].mxu1  ;;  %v3341_v50 = vld [vmem:[%s6239_s3 + $0x288] sm:$0xff]  ;;  %v499_v3 = vrot.slane %v5379_v42, %v498_v59  ;;  %v5050_v6 = vadd.f32 %v5366_v54, %v487_v45  ;;  %v3343_v54 = vld [vmem:[%s6239_s3 + $0x298] sm:$0xff]  ;;  %v4898_v45 = vpack.c.bf16 %v3361_v36, %v3360_v32 }
 0x1ed   :  { %4841 = vmatprep.subr.bf16.mxu1 %v4840_v61  ;;  %v4822_v61 = vpack.c.bf16 %v3275_v41, %v3274_v40  ;;  %v4856_v0 = vpack.c.bf16 %v3341_v50, %v3340_v49  ;;  %v3357_v8 = vld [vmem:[%s6239_s3 + $0x308] sm:$0xff]  ;;  %v3378_v40 = vld [vmem:[%s6239_s3 + $0x3b0] sm:$0xff]  ;;  %v3379_v41 = vld [vmem:[%s6239_s3 + $0x3b8] sm:$0xff] }
 0x1ee   :  { %v5053_v9 = vadd.f32 %v5522_v21, %v499_v3  ;;  %v3375_v21 = vld [vmem:[%s6239_s3 + $0x398] sm:$0xff]  ;;  %v4890_v12 = vpack.c.bf16 %v3357_v8, %v3356_v51  ;;  %v3246_v15 = vmax.f32 %v5050_v6, 0.0  ;;  %v3362_v50 = vld [vmem:[%s6239_s3 + $0x330] sm:$0xff]  ;;  %v4900_v3 = vpack.c.bf16 %v3379_v41, %v3378_v40  ;;  %v3333_v6 = vld [vmem:[%s6239_s3 + $0x248] sm:$0xff] }
 0x1ef   :  { %4811 = vmatpush3.bf16.msra.mxu0 %v4810_v7  ;;  %v4888_v7 = vpack.c.bf16 %v3373_v53, %v3372_v52  ;;  %v3331_v49 = vld [vmem:[%s6239_s3 + $0x238] sm:$0xff]  ;;  %v3348_v53 = vld [vmem:[%s6239_s3 + $0x2c0] sm:$0xff]  ;;  %v3365_v8 = vld [vmem:[%s6239_s3 + $0x348] sm:$0xff] }
 0x1f0   :  { %4843 = vmatpush3.bf16.msra.mxu1 %v4842_v55  ;;  %4813 = vmatprep.subr.bf16.mxu0 %v4812_v10  ;;  %v3342_v55 = vld [vmem:[%s6239_s3 + $0x290] sm:$0xff]  ;;  %v5055_v10 = vadd.f32 %v5530_v5, %v507_v57  ;;  %v3327_v5 = vld [vmem:[%s6239_s3 + $0x218] sm:$0xff]  ;;  %v3349_v57 = vld [vmem:[%s6239_s3 + $0x2c8] sm:$0xff] }
 0x1f1   :  { %4845 = vmatprep.subr.bf16.mxu1 %v4844_v13  ;;  %v3326_v13 = vld [vmem:[%s6239_s3 + $0x210] sm:$0xff]  ;;  %v4860_v16 = vpack.c.bf16 %v3343_v54, %v3342_v55  ;;  %v3363_v52 = vld [vmem:[%s6239_s3 + $0x338] sm:$0xff]  ;;  %v4872_v2 = vpack.c.bf16 %v3349_v57, %v3348_v53  ;;  %v3436_v53 = vld [vmem:[%s6239_s3 + $0x580] sm:$0xff] }
 0x1f2   :  { %v3251_v26 = vmax.f32 %v5055_v10, 0.0  ;;  %v3351_v55 = vld [vmem:[%s6239_s3 + $0x2d8] sm:$0xff]  ;;  %v3382_v54 = vld [vmem:[%s6239_s3 + $0x3d0] sm:$0xff] }
 0x1f3   :  { %4815 = vmatpush3.bf16.msra.mxu0 %v4814_v19  ;;  %v3345_v19 = vld [vmem:[%s6239_s3 + $0x2a8] sm:$0xff]  ;;  %v3383_v10 = vld [vmem:[%s6239_s3 + $0x3d8] sm:$0xff] }
 0x1f4   :  { %4847 = vmatpush3.bf16.msra.mxu1 %v4846_v22  ;;  %4817 = vmatprep.subr.bf16.mxu0 %v4816_v23  ;;  %v3249_v22 = vmax.f32 %v5053_v9, 0.0  ;;  %v4892_v23 = vpack.c.bf16 %v3375_v21, %v3374_v60  ;;  %v4864_v29 = vpack.c.bf16 %v3345_v19, %v3344_v18  ;;  %v3350_v9 = vld [vmem:[%s6239_s3 + $0x2d0] sm:$0xff]  ;;  %v3385_v18 = vld [vmem:[%s6239_s3 + $0x3e8] sm:$0xff]  ;;  %v3355_v32 = vld [vmem:[%s6239_s3 + $0x2f8] sm:$0xff] }
 0x1f5   :  { %4849 = vmatprep.subr.bf16.mxu1 %v4848_v33  ;;  %v4862_v33 = vpack.c.bf16 %v3327_v5, %v3326_v13  ;;  %v4876_v21 = vpack.c.bf16 %v3351_v55, %v3350_v9  ;;  %v3366_v13 = vld [vmem:[%s6239_s3 + $0x350] sm:$0xff]  ;;  %v4908_v5 = vpack.c.bf16 %v3383_v10, %v3382_v54  ;;  %v3387_v36 = vld [vmem:[%s6239_s3 + $0x3f8] sm:$0xff]  ;;  %v4884_v41 = vpack.c.bf16 %v3355_v32, %v3354_v31 }
 0x1f6   :  { %v3438_v9 = vld [vmem:[%s6239_s3 + $0x590] sm:$0xff]  ;;  %v3411_v31 = vld [vmem:[%s6239_s3 + $0x4b8] sm:$0xff] }
 0x1f7   :  { %4819 = vmatpush3.bf16.msra.mxu0 %v4818_v35  ;;  %v4896_v35 = vpack.c.bf16 %v3377_v25, %v3376_v24  ;;  %v3336_v25 = vld [vmem:[%s6239_s3 + $0x260] sm:$0xff]  ;;  %v3442_v32 = vld [vmem:[%s6239_s3 + $0x5b0] sm:$0xff] }
 0x1f8   :  { %4851 = vmatpush3.bf16.msra.mxu1 %v4850_v37  ;;  %4821 = vmatprep.subr.bf16.mxu0 %v4820_v38  ;;  %v3346_v37 = vld [vmem:[%s6239_s3 + $0x2b0] sm:$0xff]  ;;  %v3347_v38 = vld [vmem:[%s6239_s3 + $0x2b8] sm:$0xff] }
 0x1f9   :  { %4853 = vmatprep.subr.bf16.mxu1 %v4852_v47  ;;  %v4868_v47 = vpack.c.bf16 %v3347_v38, %v3346_v37 }
 0x1fb   :  { %4823 = vmatpush3.bf16.msra.mxu0 %v4822_v61  ;;  %v3380_v61 = vld [vmem:[%s6239_s3 + $0x3c0] sm:$0xff] }
 0x1fc   :  { %4855 = vmatpush3.bf16.msra.mxu1 %v4854_v63  ;;  %4857 = vmatprep.subr.bf16.mxu0 %v4856_v0  ;;  %v4870_v63 = vpack.c.bf16 %v3331_v49, %v3330_v48  ;;  %v4902_v0 = vpack.c.bf16 %v3363_v52, %v3362_v50  ;;  %v4904_v51 = vpack.c.bf16 %v3381_v62, %v3380_v61  ;;  %v3371_v50 = vld [vmem:[%s6239_s3 + $0x378] sm:$0xff]  ;;  %v3405_v52 = vld [vmem:[%s6239_s3 + $0x488] sm:$0xff] }
 0x1fd   :  { %4889 = vmatprep.subr.bf16.mxu1 %v4888_v7  ;;  %v3364_v7 = vld [vmem:[%s6239_s3 + $0x340] sm:$0xff] }
 0x1fe   :  { %3588 = vmatmul.mubr.f32.vlgmr.msra.gmra.mrb[16].mxu0 %v3244_v30  ;;  %v4906_v60 = vpack.c.bf16 %v3365_v8, %v3364_v7  ;;  %v3334_v30 = vld [vmem:[%s6239_s3 + $0x250] sm:$0xff]  ;;  %v3421_v7 = vld [vmem:[%s6239_s3 + $0x508] sm:$0xff]  ;;  %v3407_v8 = vld [vmem:[%s6239_s3 + $0x498] sm:$0xff] }
 0x1ff   :  { %3658 = vmatmul.mubr.f32.vlgmr.msra.gmra.mrb[16].mxu1 %v3246_v15  ;;  %4859 = vmatpush3.bf16.msra.mxu0 %v4858_v11  ;;  %v4874_v11 = vpack.c.bf16 %v3333_v6, %v3332_v4  ;;  %v3352_v15 = vld [vmem:[%s6239_s3 + $0x2e0] sm:$0xff] }
 0x200   :  { %3727 = vmatprep.mubr.f32.mxu0 %v3249_v22  ;;  %4891 = vmatpush3.bf16.msra.mxu1 %v4890_v12  ;;  %v3335_v12 = vld [vmem:[%s6239_s3 + $0x258] sm:$0xff]  ;;  %v494_v22 = vsub.s32 4, %v5308_v46  ;;  %v3420_v4 = vld [vmem:[%s6239_s3 + $0x500] sm:$0xff] }
 0x201   :  { %3797 = vmatprep.mubr.f32.mxu1 %v3251_v26  ;;  %4861 = vmatprep.subr.bf16.mxu0 %v4860_v16  ;;  %v3353_v16 = vld [vmem:[%s6239_s3 + $0x2e8] sm:$0xff]  ;;  %v4878_v19 = vpack.c.bf16 %v3335_v12, %v3334_v30  ;;  %v4954_v10 = vpack.c.bf16 %v3421_v7, %v3420_v4  ;;  %v3422_v30 = vld [vmem:[%s6239_s3 + $0x510] sm:$0xff]  ;;  %v3415_v4 = vld [vmem:[%s6239_s3 + $0x4d8] sm:$0xff] }
 0x202   :  { %4893 = vmatprep.subr.bf16.mxu1 %v4892_v23  ;;  %v4910_v23 = vpack.c.bf16 %v3367_v14, %v3366_v13  ;;  %v4880_v24 = vpack.c.bf16 %v3353_v16, %v3352_v15  ;;  %v3337_v26 = vld [vmem:[%s6239_s3 + $0x268] sm:$0xff]  ;;  %v495_v38 = vrot.slane %v5379_v42, %v494_v22  ;;  %v3408_v14 = vld [vmem:[%s6239_s3 + $0x4a0] sm:$0xff] }
 0x203   :  { %4863 = vmatpush3.bf16.msra.mxu0 %v4862_v33  ;;  %v3368_v33 = vld [vmem:[%s6239_s3 + $0x360] sm:$0xff]  ;;  %v4882_v37 = vpack.c.bf16 %v3337_v26, %v3336_v25  ;;  %v3409_v15 = vld [vmem:[%s6239_s3 + $0x4a8] sm:$0xff] }
 0x204   :  { %4895 = vmatpush3.bf16.msra.mxu1 %v4894_v28  ;;  %4865 = vmatprep.subr.bf16.mxu0 %v4864_v29  ;;  %v502_v28 = vsub.s32 6, %v5308_v46  ;;  %v4912_v29 = vpack.c.bf16 %v3385_v18, %v3384_v17  ;;  %v4914_v40 = vpack.c.bf16 %v3369_v56, %v3368_v33  ;;  %v5052_v61 = vadd.f32 %v5509_v58, %v495_v38  ;;  %v3440_v16 = vld [vmem:[%s6239_s3 + $0x5a0] sm:$0xff]  ;;  %v3441_v17 = vld [vmem:[%s6239_s3 + $0x5a8] sm:$0xff]  ;;  %v3410_v56 = vld [vmem:[%s6239_s3 + $0x4b0] sm:$0xff] }
 0x205   :  { %4897 = vmatprep.subr.bf16.mxu1 %v4896_v35  ;;  %v3386_v35 = vld [vmem:[%s6239_s3 + $0x3f0] sm:$0xff]  ;;  %v3393_v25 = vld [vmem:[%s6239_s3 + $0x428] sm:$0xff]  ;;  %v3424_v26 = vld [vmem:[%s6239_s3 + $0x520] sm:$0xff]  ;;  %v4960_v33 = vpack.c.bf16 %v3441_v17, %v3440_v16  ;;  %v4932_v38 = vpack.c.bf16 %v3411_v31, %v3410_v56 }
 0x206   :  { %v503_v48 = vrot.slane %v5379_v42, %v502_v28  ;;  %v4916_v49 = vpack.c.bf16 %v3387_v36, %v3386_v35  ;;  %v3437_v42 = vld [vmem:[%s6239_s3 + $0x588] sm:$0xff]  ;;  %v3248_v54 = vmax.f32 %v5052_v61, 0.0  ;;  %v3443_v35 = vld [vmem:[%s6239_s3 + $0x5b8] sm:$0xff]  ;;  %v3432_v16 = vld [vmem:[%s6239_s3 + $0x560] sm:$0xff] }
 0x207   :  { %4867 = vmatpush3.bf16.msra.mxu0 %v4866_v44  ;;  %v3338_v44 = vld [vmem:[%s6239_s3 + $0x270] sm:$0xff]  ;;  %v4952_v58 = vpack.c.bf16 %v3437_v42, %v3436_v53  ;;  %v3397_v61 = vld [vmem:[%s6239_s3 + $0x448] sm:$0xff]  ;;  %v3403_v31 = vld [vmem:[%s6239_s3 + $0x478] sm:$0xff] }
 0x208   :  { %4899 = vmatpush3.bf16.msra.mxu1 %v4898_v45  ;;  %4869 = vmatprep.subr.bf16.mxu0 %v4868_v47  ;;  %v3339_v45 = vld [vmem:[%s6239_s3 + $0x278] sm:$0xff]  ;;  %v3370_v47 = vld [vmem:[%s6239_s3 + $0x370] sm:$0xff]  ;;  %v5054_v6 = vadd.f32 %v5520_v1, %v503_v48  ;;  %v3412_v48 = vld [vmem:[%s6239_s3 + $0x4c0] sm:$0xff] }
 0x209   :  { %4901 = vmatprep.subr.bf16.mxu1 %v4900_v3  ;;  %v3404_v3 = vld [vmem:[%s6239_s3 + $0x480] sm:$0xff]  ;;  %v4886_v57 = vpack.c.bf16 %v3339_v45, %v3338_v44  ;;  %v4918_v62 = vpack.c.bf16 %v3371_v50, %v3370_v47  ;;  %v3439_v1 = vld [vmem:[%s6239_s3 + $0x598] sm:$0xff]  ;;  %v3426_v44 = vld [vmem:[%s6239_s3 + $0x530] sm:$0xff]  ;;  %v4964_v45 = vpack.c.bf16 %v3443_v35, %v3442_v32 }
 0x20a   :  { %v3250_v12 = vmax.f32 %v5054_v6, 0.0  ;;  %v4956_v13 = vpack.c.bf16 %v3439_v1, %v3438_v9  ;;  %v3427_v47 = vld [vmem:[%s6239_s3 + $0x538] sm:$0xff]  ;;  %v3444_v50 = vld [vmem:[%s6239_s3 + $0x5c0] sm:$0xff]  ;;  %v3446_v6 = vld [vmem:[%s6239_s3 + $0x5d0] sm:$0xff] }
 0x20b   :  { %4871 = vmatpush3.bf16.msra.mxu0 %v4870_v63  ;;  %v4920_v63 = vpack.c.bf16 %v3405_v52, %v3404_v3  ;;  %v3445_v3 = vld [vmem:[%s6239_s3 + $0x5c8] sm:$0xff]  ;;  %v4966_v53 = vpack.c.bf16 %v3427_v47, %v3426_v44  ;;  %v3398_v9 = vld [vmem:[%s6239_s3 + $0x450] sm:$0xff]  ;;  %v3399_v1 = vld [vmem:[%s6239_s3 + $0x458] sm:$0xff] }
 0x20c   :  { %4903 = vmatpush3.bf16.msra.mxu1 %v4902_v0  ;;  %4873 = vmatprep.subr.bf16.mxu0 %v4872_v2  ;;  %v3388_v0 = vld [vmem:[%s6239_s3 + $0x400] sm:$0xff]  ;;  %v3389_v2 = vld [vmem:[%s6239_s3 + $0x408] sm:$0xff]  ;;  %v3402_v56 = vld [vmem:[%s6239_s3 + $0x470] sm:$0xff] }
 0x20d   :  { %4905 = vmatprep.subr.bf16.mxu1 %v4904_v51  ;;  %v3406_v51 = vld [vmem:[%s6239_s3 + $0x490] sm:$0xff]  ;;  %v4922_v55 = vpack.c.bf16 %v3389_v2, %v3388_v0  ;;  %v3429_v0 = vld [vmem:[%s6239_s3 + $0x548] sm:$0xff]  ;;  %v4950_v44 = vpack.c.bf16 %v3403_v31, %v3402_v56  ;;  %v3488_v56 = vld [vmem:[%s6239_s3 + $0x720] sm:$0xff] }
 0x20e   :  { %v3414_v2 = vld [vmem:[%s6239_s3 + $0x4d0] sm:$0xff] }
 0x20f   :  { %4875 = vmatpush3.bf16.msra.mxu0 %v4874_v11  ;;  %v4924_v11 = vpack.c.bf16 %v3407_v8, %v3406_v51  ;;  %v4940_v8 = vpack.c.bf16 %v3415_v4, %v3414_v2  ;;  %v3434_v32 = vld [vmem:[%s6239_s3 + $0x570] sm:$0xff]  ;;  %v3485_v4 = vld [vmem:[%s6239_s3 + $0x708] sm:$0xff] }
 0x210   :  { %4907 = vmatpush3.bf16.msra.mxu1 %v4906_v60  ;;  %4877 = vmatprep.subr.bf16.mxu0 %v4876_v21  ;;  %v3390_v60 = vld [vmem:[%s6239_s3 + $0x410] sm:$0xff]  ;;  %v3391_v21 = vld [vmem:[%s6239_s3 + $0x418] sm:$0xff] }
 0x211   :  { %4909 = vmatprep.subr.bf16.mxu1 %v4908_v5  ;;  %v3423_v5 = vld [vmem:[%s6239_s3 + $0x518] sm:$0xff]  ;;  %v4926_v18 = vpack.c.bf16 %v3391_v21, %v3390_v60  ;;  %v3417_v60 = vld [vmem:[%s6239_s3 + $0x4e8] sm:$0xff]  ;;  %v3448_v21 = vld [vmem:[%s6239_s3 + $0x5e0] sm:$0xff] }
 0x213   :  { %4879 = vmatpush3.bf16.msra.mxu0 %v4878_v19  ;;  %v4958_v19 = vpack.c.bf16 %v3423_v5, %v3422_v30  ;;  %v3449_v30 = vld [vmem:[%s6239_s3 + $0x5e8] sm:$0xff] }
 0x214   :  { %4911 = vmatpush3.bf16.msra.mxu1 %v4910_v23  ;;  %4881 = vmatprep.subr.bf16.mxu0 %v4880_v24  ;;  %v4928_v23 = vpack.c.bf16 %v3409_v15, %v3408_v14  ;;  %v3392_v24 = vld [vmem:[%s6239_s3 + $0x420] sm:$0xff]  ;;  %v3401_v15 = vld [vmem:[%s6239_s3 + $0x468] sm:$0xff]  ;;  %v4976_v17 = vpack.c.bf16 %v3449_v30, %v3448_v21 }
 0x215   :  { %4913 = vmatprep.subr.bf16.mxu1 %v4912_v29  ;;  %v3425_v29 = vld [vmem:[%s6239_s3 + $0x528] sm:$0xff]  ;;  %v4930_v36 = vpack.c.bf16 %v3393_v25, %v3392_v24  ;;  %v3400_v14 = vld [vmem:[%s6239_s3 + $0x460] sm:$0xff]  ;;  %v3450_v24 = vld [vmem:[%s6239_s3 + $0x5f0] sm:$0xff] }
 0x216   :  { %v3451_v25 = vld [vmem:[%s6239_s3 + $0x5f8] sm:$0xff] }
 0x217   :  { %4883 = vmatpush3.bf16.msra.mxu0 %v4882_v37  ;;  %v4962_v37 = vpack.c.bf16 %v3425_v29, %v3424_v26  ;;  %v4946_v26 = vpack.c.bf16 %v3401_v15, %v3400_v14  ;;  %v4980_v35 = vpack.c.bf16 %v3451_v25, %v3450_v24 }
 0x218   :  { %4915 = vmatpush3.bf16.msra.mxu1 %v4914_v40  ;;  %4885 = vmatprep.subr.bf16.mxu0 %v4884_v41  ;;  %v3394_v40 = vld [vmem:[%s6239_s3 + $0x430] sm:$0xff]  ;;  %v3395_v41 = vld [vmem:[%s6239_s3 + $0x438] sm:$0xff] }
 0x219   :  { %4917 = vmatprep.subr.bf16.mxu1 %v4916_v49  ;;  %v3413_v49 = vld [vmem:[%s6239_s3 + $0x4c8] sm:$0xff]  ;;  %v4934_v52 = vpack.c.bf16 %v3395_v41, %v3394_v40  ;;  %v3500_v40 = vld [vmem:[%s6239_s3 + $0x780] sm:$0xff] }
 0x21a   :  { %v4936_v42 = vpack.c.bf16 %v3413_v49, %v3412_v48  ;;  %v3501_v41 = vld [vmem:[%s6239_s3 + $0x788] sm:$0xff] }
 0x21b   :  { %4887 = vmatpush3.bf16.msra.mxu0 %v4886_v57  ;;  %v3396_v57 = vld [vmem:[%s6239_s3 + $0x440] sm:$0xff]  ;;  %v5016_v48 = vpack.c.bf16 %v3501_v41, %v3500_v40  ;;  %v6018_v49 = vld [vmem:[#allocation7 + $0x8] sm:$0xff] }
 0x21c   :  { %4919 = vmatpush3.bf16.msra.mxu1 %v4918_v62  ;;  %4921 = vmatprep.subr.bf16.mxu0 %v4920_v63  ;;  %v3428_v62 = vld [vmem:[%s6239_s3 + $0x540] sm:$0xff]  ;;  %v4968_v63 = vpack.c.bf16 %v3445_v3, %v3444_v50  ;;  %v4938_v7 = vpack.c.bf16 %v3397_v61, %v3396_v57  ;;  %v511_v50 = vrot.slane %v6018_v49, %v478_v20 }
 0x21d   :  { %4953 = vmatprep.subr.bf16.mxu1 %v4952_v58  ;;  %v3447_v58 = vld [vmem:[%s6239_s3 + $0x5d8] sm:$0xff]  ;;  %v4970_v51 = vpack.c.bf16 %v3429_v0, %v3428_v62  ;;  %v519_v3 = vrot.slane %v6018_v49, %v486_v27  ;;  %v3452_v20 = vld [vmem:[%s6239_s3 + $0x600] sm:$0xff]  ;;  %v3453_v27 = vld [vmem:[%s6239_s3 + $0x608] sm:$0xff] }
 0x21e   :  { %3728 = vmatmul.mubr.f32.vlgmr.msra.gmra.mrb[18].mxu0 %v3248_v54  ;;  %v4972_v54 = vpack.c.bf16 %v3447_v58, %v3446_v6  ;;  %v3470_v6 = vld [vmem:[%s6239_s3 + $0x690] sm:$0xff]  ;;  %v3471_v58 = vld [vmem:[%s6239_s3 + $0x698] sm:$0xff] }
 0x21f   :  { %3798 = vmatmul.mubr.f32.vlgmr.msra.gmra.mrb[18].mxu1 %v3250_v12  ;;  %4923 = vmatpush3.bf16.msra.mxu0 %v4922_v55  ;;  %v3430_v55 = vld [vmem:[%s6239_s3 + $0x550] sm:$0xff]  ;;  %v4942_v12 = vpack.c.bf16 %v3399_v1, %v3398_v9  ;;  %v3503_v1 = vld [vmem:[%s6239_s3 + $0x798] sm:$0xff]  ;;  %v4988_v30 = vpack.c.bf16 %v3471_v58, %v3470_v6 }
 0x220   :  { %4955 = vmatpush3.bf16.msra.mxu1 %v4954_v10  ;;  %4925 = vmatprep.subr.bf16.mxu0 %v4924_v11  ;;  %v3431_v10 = vld [vmem:[%s6239_s3 + $0x558] sm:$0xff]  ;;  %v3416_v11 = vld [vmem:[%s6239_s3 + $0x4e0] sm:$0xff]  ;;  %v3502_v9 = vld [vmem:[%s6239_s3 + $0x790] sm:$0xff] }
 0x221   :  { %4957 = vmatprep.subr.bf16.mxu1 %v4956_v13  ;;  %v4974_v13 = vpack.c.bf16 %v3431_v10, %v3430_v55  ;;  %v4944_v5 = vpack.c.bf16 %v3417_v60, %v3416_v11  ;;  %v4986_v10 = vpack.c.bf16 %v3453_v27, %v3452_v20  ;;  %v5020_v15 = vpack.c.bf16 %v3503_v1, %v3502_v9  ;;  %v3460_v27 = vld [vmem:[%s6239_s3 + $0x640] sm:$0xff]  ;;  %v3510_v6 = vld [vmem:[%s6239_s3 + $0x7d0] sm:$0xff]  ;;  %v3511_v58 = vld [vmem:[%s6239_s3 + $0x7d8] sm:$0xff] }
 0x222   :  { %v3462_v9 = vld [vmem:[%s6239_s3 + $0x650] sm:$0xff]  ;;  %v3463_v1 = vld [vmem:[%s6239_s3 + $0x658] sm:$0xff] }
 0x223   :  { %4927 = vmatpush3.bf16.msra.mxu0 %v4926_v18  ;;  %v3433_v18 = vld [vmem:[%s6239_s3 + $0x568] sm:$0xff] }
 0x224   :  { %4959 = vmatpush3.bf16.msra.mxu1 %v4958_v19  ;;  %4929 = vmatprep.subr.bf16.mxu0 %v4928_v23  ;;  %v3418_v19 = vld [vmem:[%s6239_s3 + $0x4f0] sm:$0xff]  ;;  %v3419_v23 = vld [vmem:[%s6239_s3 + $0x4f8] sm:$0xff] }
 0x225   :  { %4961 = vmatprep.subr.bf16.mxu1 %v4960_v33  ;;  %v4978_v33 = vpack.c.bf16 %v3433_v18, %v3432_v16  ;;  %v4948_v29 = vpack.c.bf16 %v3419_v23, %v3418_v19  ;;  %v3487_v16 = vld [vmem:[%s6239_s3 + $0x718] sm:$0xff]  ;;  %v3473_v18 = vld [vmem:[%s6239_s3 + $0x6a8] sm:$0xff]  ;;  %v3504_v19 = vld [vmem:[%s6239_s3 + $0x7a0] sm:$0xff] }
 0x226   :  { %v3505_v23 = vld [vmem:[%s6239_s3 + $0x7a8] sm:$0xff] }
 0x227   :  { %4931 = vmatpush3.bf16.msra.mxu0 %v4930_v36  ;;  %v3435_v36 = vld [vmem:[%s6239_s3 + $0x578] sm:$0xff]  ;;  %v5024_v31 = vpack.c.bf16 %v3505_v23, %v3504_v19  ;;  %v3482_v19 = vld [vmem:[%s6239_s3 + $0x6f0] sm:$0xff] }
 0x228   :  { %4963 = vmatpush3.bf16.msra.mxu1 %v4962_v37  ;;  %4933 = vmatprep.subr.bf16.mxu0 %v4932_v38  ;;  %v3468_v37 = vld [vmem:[%s6239_s3 + $0x680] sm:$0xff]  ;;  %v3469_v38 = vld [vmem:[%s6239_s3 + $0x688] sm:$0xff]  ;;  %v3483_v23 = vld [vmem:[%s6239_s3 + $0x6f8] sm:$0xff] }
 0x229   :  { %4965 = vmatprep.subr.bf16.mxu1 %v4964_v45  ;;  %v4982_v45 = vpack.c.bf16 %v3435_v36, %v3434_v32  ;;  %v4984_v47 = vpack.c.bf16 %v3469_v38, %v3468_v37  ;;  %v3489_v32 = vld [vmem:[%s6239_s3 + $0x728] sm:$0xff]  ;;  %v3475_v36 = vld [vmem:[%s6239_s3 + $0x6b8] sm:$0xff]  ;;  %v3506_v37 = vld [vmem:[%s6239_s3 + $0x7b0] sm:$0xff] }
 0x22a   :  { %v3507_v38 = vld [vmem:[%s6239_s3 + $0x7b8] sm:$0xff]  ;;  %v5026_v41 = vpack.c.bf16 %v3489_v32, %v3488_v56  ;;  %v3466_v56 = vld [vmem:[%s6239_s3 + $0x670] sm:$0xff] }
 0x22b   :  { %4935 = vmatpush3.bf16.msra.mxu0 %v4934_v52  ;;  %v515_v52 = vrot.slane %v6018_v49, %v482_v39  ;;  %v3484_v39 = vld [vmem:[%s6239_s3 + $0x700] sm:$0xff] }
 0x22c   :  { %4967 = vmatpush3.bf16.msra.mxu1 %v4966_v53  ;;  %4937 = vmatprep.subr.bf16.mxu0 %v4936_v42  ;;  %v523_v53 = vrot.slane %v6018_v49, %v490_v43  ;;  %v5018_v21 = vpack.c.bf16 %v3485_v4, %v3484_v39  ;;  %v3461_v39 = vld [vmem:[%s6239_s3 + $0x648] sm:$0xff]  ;;  %v3479_v4 = vld [vmem:[%s6239_s3 + $0x6d8] sm:$0xff] }
 0x22d   :  { %4969 = vmatprep.subr.bf16.mxu1 %v4968_v63 }
 0x22f   :  { %4939 = vmatpush3.bf16.msra.mxu0 %v4938_v7 }
 0x230   :  { %4971 = vmatpush3.bf16.msra.mxu1 %v4970_v51  ;;  %4941 = vmatprep.subr.bf16.mxu0 %v4940_v8 }
 0x231   :  { %4973 = vmatprep.subr.bf16.mxu1 %v4972_v54 }
 0x233   :  { %4943 = vmatpush3.bf16.msra.mxu0 %v4942_v12  ;;  %v3454_v12 = vld [vmem:[%s6239_s3 + $0x610] sm:$0xff] }
 0x234   :  { %4975 = vmatpush3.bf16.msra.mxu1 %v4974_v13  ;;  %4945 = vmatprep.subr.bf16.mxu0 %v4944_v5  ;;  %v3455_v13 = vld [vmem:[%s6239_s3 + $0x618] sm:$0xff]  ;;  %v3486_v5 = vld [vmem:[%s6239_s3 + $0x710] sm:$0xff] }
 0x235   :  { %4977 = vmatprep.subr.bf16.mxu1 %v4976_v17  ;;  %v3472_v17 = vld [vmem:[%s6239_s3 + $0x6a0] sm:$0xff]  ;;  %v4990_v24 = vpack.c.bf16 %v3455_v13, %v3454_v12  ;;  %v5022_v25 = vpack.c.bf16 %v3487_v16, %v3486_v5  ;;  %v5006_v12 = vpack.c.bf16 %v3463_v1, %v3462_v9 }
 0x236   :  { %v3496_v16 = vld [vmem:[%s6239_s3 + $0x760] sm:$0xff] }
 0x237   :  { %4947 = vmatpush3.bf16.msra.mxu0 %v4946_v26  ;;  %v4992_v26 = vpack.c.bf16 %v3473_v18, %v3472_v17  ;;  %v3497_v18 = vld [vmem:[%s6239_s3 + $0x768] sm:$0xff] }
 0x238   :  { %4979 = vmatpush3.bf16.msra.mxu1 %v4978_v33  ;;  %4949 = vmatprep.subr.bf16.mxu0 %v4948_v29  ;;  %v3456_v33 = vld [vmem:[%s6239_s3 + $0x620] sm:$0xff]  ;;  %v3457_v29 = vld [vmem:[%s6239_s3 + $0x628] sm:$0xff] }
 0x239   :  { %4981 = vmatprep.subr.bf16.mxu1 %v4980_v35  ;;  %v3474_v35 = vld [vmem:[%s6239_s3 + $0x6b0] sm:$0xff]  ;;  %v4994_v40 = vpack.c.bf16 %v3457_v29, %v3456_v33  ;;  %v5042_v33 = vpack.c.bf16 %v3497_v18, %v3496_v16  ;;  %v5012_v29 = vpack.c.bf16 %v3483_v23, %v3482_v19 }
 0x23b   :  { %4951 = vmatpush3.bf16.msra.mxu0 %v4950_v44  ;;  %v4996_v44 = vpack.c.bf16 %v3475_v36, %v3474_v35  ;;  %v3498_v35 = vld [vmem:[%s6239_s3 + $0x770] sm:$0xff]  ;;  %v3499_v36 = vld [vmem:[%s6239_s3 + $0x778] sm:$0xff] }
 0x23c   :  { %4983 = vmatpush3.bf16.msra.mxu1 %v4982_v45  ;;  %4985 = vmatprep.subr.bf16.mxu0 %v4984_v47  ;;  %v3458_v45 = vld [vmem:[%s6239_s3 + $0x630] sm:$0xff]  ;;  %v3459_v47 = vld [vmem:[%s6239_s3 + $0x638] sm:$0xff] }
 0x23d   :  { %5017 = vmatprep.subr.bf16.mxu1 %v5016_v48  ;;  %v3490_v48 = vld [vmem:[%s6239_s3 + $0x730] sm:$0xff] }
 0x24d   :  { %v2991_v42 = vpop.f32.mrb[8].mxu0  ;;  %v3073_v61 = vpop.f32.mrb[8].mxu1 }
 0x24e   :  { %v5056_v57 = vadd.f32 %v2991_v42, %v511_v50  ;;  %v2993_v62 = vpop.f32.mrb[9].mxu0  ;;  %v5058_v63 = vadd.f32 %v3073_v61, %v519_v3  ;;  %v3075_v2 = vpop.f32.mrb[9].mxu1  ;;  %v5028_v50 = vpack.c.bf16 %v3507_v38, %v3506_v37  ;;  %v3491_v3 = vld [vmem:[%s6239_s3 + $0x738] sm:$0xff]  ;;  %v3508_v42 = vld [vmem:[%s6239_s3 + $0x7c0] sm:$0xff]  ;;  %v4998_v61 = vpack.c.bf16 %v3459_v47, %v3458_v45 }
 0x24f   :  { %v5057_v0 = vadd.f32 %v2993_v62, %v515_v52  ;;  %v2995_v43 = vpop.f32.mrb[10].mxu0  ;;  %v5059_v7 = vadd.f32 %v3075_v2, %v523_v53  ;;  %v3077_v51 = vpop.f32.mrb[10].mxu1  ;;  %v3476_v52 = vld [vmem:[%s6239_s3 + $0x6c0] sm:$0xff]  ;;  %v3477_v53 = vld [vmem:[%s6239_s3 + $0x6c8] sm:$0xff]  ;;  %v5030_v62 = vpack.c.bf16 %v3491_v3, %v3490_v48  ;;  %v5046_v38 = vpack.c.bf16 %v3499_v36, %v3498_v35 }
 0x250   :  { %v2996_v8 = vpop.f32.mrb[11].mxu0  ;;  %v3078_v54 = vpop.f32.mrb[11].mxu1  ;;  %v3252_v11 = vmax.f32 %v5056_v57, 0.0  ;;  %v3254_v14 = vmax.f32 %v5058_v63, 0.0  ;;  %v3509_v57 = vld [vmem:[%s6239_s3 + $0x7c8] sm:$0xff]  ;;  %v5000_v20 = vpack.c.bf16 %v3477_v53, %v3476_v52  ;;  %v3492_v63 = vld [vmem:[%s6239_s3 + $0x740] sm:$0xff]  ;;  %v539_v45 = vrot.slane %v6018_v49, %v506_v34 }
 0x251   :  { %v3253_v55 = vmax.f32 %v5057_v0, 0.0  ;;  %v3255_v60 = vmax.f32 %v5059_v7, 0.0  ;;  %v5032_v0 = vpack.c.bf16 %v3509_v57, %v3508_v42  ;;  %v3493_v2 = vld [vmem:[%s6239_s3 + $0x748] sm:$0xff]  ;;  %v3478_v43 = vld [vmem:[%s6239_s3 + $0x6d0] sm:$0xff]  ;;  %v5002_v7 = vpack.c.bf16 %v3461_v39, %v3460_v27 }
 0x252   :  { %v5034_v51 = vpack.c.bf16 %v3493_v2, %v3492_v63  ;;  %v5004_v8 = vpack.c.bf16 %v3479_v4, %v3478_v43  ;;  %v5036_v54 = vpack.c.bf16 %v3511_v58, %v3510_v6 }
 0x253   :  { %3867 = vmatprep.mubr.f32.mxu0 %v3253_v55  ;;  %3937 = vmatprep.mubr.f32.mxu1 %v3255_v60  ;;  %v3494_v55 = vld [vmem:[%s6239_s3 + $0x750] sm:$0xff]  ;;  %v3481_v60 = vld [vmem:[%s6239_s3 + $0x6e8] sm:$0xff] }
 0x254   :  { %3868 = vmatmul.mubr.f32.vlgmr.msra.gmra.mrb[20].mxu0 %v3252_v11  ;;  %3938 = vmatmul.mubr.f32.vlgmr.msra.gmra.mrb[20].mxu1 %v3254_v14  ;;  %v3480_v11 = vld [vmem:[%s6239_s3 + $0x6e0] sm:$0xff] }
 0x255   :  { %4987 = vmatpush3.bf16.msra.mxu0 %v4986_v10  ;;  %5019 = vmatpush3.bf16.msra.mxu1 %v5018_v21  ;;  %v3495_v10 = vld [vmem:[%s6239_s3 + $0x758] sm:$0xff]  ;;  %v3512_v21 = vld [vmem:[%s6239_s3 + $0x7e0] sm:$0xff]  ;;  %v5008_v5 = vpack.c.bf16 %v3481_v60, %v3480_v11 }
 0x256   :  { %4989 = vmatprep.subr.bf16.mxu0 %v4988_v30  ;;  %5021 = vmatprep.subr.bf16.mxu1 %v5020_v15  ;;  %v3513_v30 = vld [vmem:[%s6239_s3 + $0x7e8] sm:$0xff]  ;;  %v5038_v13 = vpack.c.bf16 %v3495_v10, %v3494_v55  ;;  %v3464_v14 = vld [vmem:[%s6239_s3 + $0x660] sm:$0xff] }
 0x257   :  { %v3465_v15 = vld [vmem:[%s6239_s3 + $0x668] sm:$0xff]  ;;  %v5040_v17 = vpack.c.bf16 %v3513_v30, %v3512_v21 }
 0x259   :  { %4991 = vmatpush3.bf16.msra.mxu0 %v4990_v24  ;;  %5023 = vmatpush3.bf16.msra.mxu1 %v5022_v25  ;;  %v3514_v24 = vld [vmem:[%s6239_s3 + $0x7f0] sm:$0xff]  ;;  %v3515_v25 = vld [vmem:[%s6239_s3 + $0x7f8] sm:$0xff] }
 0x25a   :  { %4993 = vmatprep.subr.bf16.mxu0 %v4992_v26  ;;  %5025 = vmatprep.subr.bf16.mxu1 %v5024_v31  ;;  %v5010_v26 = vpack.c.bf16 %v3465_v15, %v3464_v14  ;;  %v3467_v31 = vld [vmem:[%s6239_s3 + $0x678] sm:$0xff]  ;;  %v5044_v32 = vpack.c.bf16 %v3515_v25, %v3514_v24  ;;  %s5229_s3 = smov [#allocation10]  }
 0x25b   :  { %v5014_v37 = vpack.c.bf16 %v3467_v31, %v3466_v56  ;;  %s4091_s7 = sshll.u32 %s5229_s3, 4  ;;  %s4092_s7 = int_to_ptr.vmem [resolvable:$true] %s4091_s7 }
 0x25c   :  { %s5192_s8 = scalar_lea.vmem %s4092_s7, 32  ;;  %p5197_p5 = scmp.lt.s32.totalorder %s4092_s7, %s4092_s7 }
 0x25d   :  { %4995 = vmatpush3.bf16.msra.mxu0 %v4994_v40  ;;  %5027 = vmatpush3.bf16.msra.mxu1 %v5026_v41  ;;  %v527_v40 = vrot.slane %v6018_v49, %v494_v22  ;;  %v535_v41 = vrot.slane %v6018_v49, %v502_v28  ;;  %p5193_p4 = scmp.ne.s32.totalorder %s4092_s7, %s5192_s8  ;;  %p5198_p6 = scmp.lt.s32.totalorder %s5192_s8, %s5192_s8 }
 0x25e   :  { %4997 = vmatprep.subr.bf16.mxu0 %v4996_v44  ;;  %5029 = vmatprep.subr.bf16.mxu1 %v5028_v50  ;;  %v531_v44 = vrot.slane %v6018_v49, %v498_v59  ;;  %v4511_v49 = vld [vmem:[#allocation8] ss:$0 sm:$0xff] }
 0x25f   :  { %p5199_p7 = por %p5198_p6, %p5197_p5 }
 0x261   :  { %4999 = vmatpush3.bf16.msra.mxu0 %v4998_v61  ;;  %5031 = vmatpush3.bf16.msra.mxu1 %v5030_v62  ;;  %p5200_p8 = pnand %p5199_p7, %p5193_p4 }
 0x262   :  { %5001 = vmatprep.subr.bf16.mxu0 %v5000_v20  ;;  %5033 = vmatprep.subr.bf16.mxu1 %v5032_v0 }
 0x265   :  { %5003 = vmatpush3.bf16.msra.mxu0 %v5002_v7  ;;  %5035 = vmatpush3.bf16.msra.mxu1 %v5034_v51 }
 0x266   :  { %5005 = vmatprep.subr.bf16.mxu0 %v5004_v8  ;;  %5037 = vmatprep.subr.bf16.mxu1 %v5036_v54 }
 0x269   :  { %5007 = vmatpush3.bf16.msra.mxu0 %v5006_v12  ;;  %5039 = vmatpush3.bf16.msra.mxu1 %v5038_v13 }
 0x26a   :  { %5009 = vmatprep.subr.bf16.mxu0 %v5008_v5  ;;  %5041 = vmatprep.subr.bf16.mxu1 %v5040_v17 }
 0x26d   :  { %5011 = vmatpush3.bf16.msra.mxu0 %v5010_v26  ;;  %5043 = vmatpush3.bf16.msra.mxu1 %v5042_v33 }
 0x26e   :  { %5013 = vmatprep.subr.bf16.mxu0 %v5012_v29  ;;  %5045 = vmatprep.subr.bf16.mxu1 %v5044_v32 }
 0x271   :  { %5015 = vmatpush3.bf16.msra.mxu0 %v5014_v37  ;;  %5047 = vmatpush3.bf16.msra.mxu1 %v5046_v38 }
 0x2b1   :  { %v3155_v47 = vpop.f32.mrb[12].mxu0  ;;  %v3237_v50 = vpop.f32.mrb[12].mxu1 }
 0x2b2   :  { %v5060_v48 = vadd.f32 %v3155_v47, %v527_v40  ;;  %v3157_v3 = vpop.f32.mrb[13].mxu0  ;;  %v5062_v52 = vadd.f32 %v3237_v50, %v535_v41  ;;  %v3239_v42 = vpop.f32.mrb[13].mxu1 }
 0x2b3   :  { %v5061_v53 = vadd.f32 %v3157_v3, %v531_v44  ;;  %v3159_v22 = vpop.f32.mrb[14].mxu0  ;;  %v5063_v57 = vadd.f32 %v3239_v42, %v539_v45  ;;  %v3241_v61 = vpop.f32.mrb[14].mxu1 }
 0x2b4   :  { %v3160_v62 = vpop.f32.mrb[15].mxu0  ;;  %v3242_v20 = vpop.f32.mrb[15].mxu1  ;;  %v3256_v27 = vmax.f32 %v5060_v48, 0.0  ;;  %v3258_v59 = vmax.f32 %v5062_v52, 0.0 }
 0x2b5   :  { %v3257_v28 = vmax.f32 %v5061_v53, 0.0  ;;  %v3259_v39 = vmax.f32 %v5063_v57, 0.0 }
 0x2b7   :  { %4007 = vmatprep.mubr.f32.mxu0 %v3257_v28  ;;  %4077 = vmatprep.mubr.f32.mxu1 %v3259_v39 }
 0x2b8   :  { %4008 = vmatmul.mubr.f32.vlgmr.msra.gmra.mrb[22].mxu0 %v3256_v27  ;;  %4078 = vmatmul.mubr.f32.vlgmr.msra.gmra.mrb[22].mxu1 %v3258_v59 }
 0x2d1   :  { %v4544_v46 = vpop.f32.mrb[16].mxu0 }
 0x2d2   :  { %v4579_v34 = vpop.f32.mrb[16].mxu1  ;;  %v4545_v63 = vpop.f32.mrb[17].mxu0 }
 0x2d3   :  { %v4546_v0 = vadd.f32 %v4545_v63, %v4544_v46  ;;  %v4580_v2 = vpop.f32.mrb[17].mxu1 }
 0x2d4   :  { %v4581_v43 = vadd.f32 %v4580_v2, %v4579_v34 }
 0x2d5   :  { %v3590_v4 = vadd.f32 %v4546_v0, %v4511_v49 }
 0x2d7   :  { %v3660_v6 = vadd.f32 %v4581_v43, %v3590_v4 }
 0x2f1   :  { %v4614_v58 = vpop.f32.mrb[18].mxu0 }
 0x2f2   :  { %v4649_v7 = vpop.f32.mrb[18].mxu1  ;;  %v4615_v51 = vpop.f32.mrb[19].mxu0 }
 0x2f3   :  { %v4616_v8 = vadd.f32 %v4615_v51, %v4614_v58  ;;  %v4650_v9 = vpop.f32.mrb[19].mxu1 }
 0x2f4   :  { %v4651_v1 = vadd.f32 %v4650_v9, %v4649_v7 }
 0x2f5   :  { %v3730_v55 = vadd.f32 %v4616_v8, %v3660_v6 }
 0x2f7   :  { %v3800_v54 = vadd.f32 %v4651_v1, %v3730_v55 }
 0x327   :  { %v4684_v10 = vpop.f32.mrb[20].mxu0  ;;  %v4719_v11 = vpop.f32.mrb[20].mxu1 }
 0x328   :  { %v4685_v60 = vpop.f32.mrb[21].mxu0  ;;  %v4720_v30 = vpop.f32.mrb[21].mxu1 }
 0x329   :  { %v4686_v21 = vadd.f32 %v4685_v60, %v4684_v10  ;;  %v4721_v12 = vadd.f32 %v4720_v30, %v4719_v11 }
 0x32b   :  { %v3870_v13 = vadd.f32 %v4686_v21, %v3800_v54 }
 0x32d   :  { %v3940_v5 = vadd.f32 %v4721_v12, %v3870_v13 }
 0x38b   :  { %v4754_v14 = vpop.f32.mrb[22].mxu0  ;;  %v4789_v15 = vpop.f32.mrb[22].mxu1 }
 0x38c   :  { %v4755_v16 = vpop.f32.mrb[23].mxu0  ;;  %v4790_v18 = vpop.f32.mrb[23].mxu1 }
 0x38d   :  { %v4756_v17 = vadd.f32 %v4755_v16, %v4754_v14  ;;  %v4791_v19 = vadd.f32 %v4790_v18, %v4789_v15 }
 0x38f   :  { %v4010_v23 = vadd.f32 %v4756_v17, %v3940_v5 }
 0x391   :  { %v4080_v24 = vadd.f32 %v4791_v19, %v4010_v23 }
 0x393   :  { %4084 = vst.msk [vmem:[#allocation10] sm:$0x3] %vm4083_vm1, %v4080_v24 }
 0x394   :  { %5203 = shalt.err (!%p5200_p8)
}
 0x395   :  { %s5204_s12 = scalar_lea.hbm %s6241_s5, 32 }
 0x396   :  { %p5205_p9 = scmp.ne.s32.totalorder %s6241_s5, %s5204_s12  ;;  %p5208_p10 = scmp.lt.u32.totalorder %s5204_s12, %s6241_s5 }
 0x398   :  { %p5210_p11 = pnand %p5208_p10, %p5205_p9 }
 0x39a   :  { %5213 = shalt.err (!%p5210_p11)
}
 0x39b   :  { %4094 = dma.vmem_to_hbm [thread:$0]  %s4092_s7, 32, %s6241_s5, [#allocation4]  }
 0x39c   :  { %5220 = dma.done.wait [#allocation4], 32  }
 0x39d   :  { %5221 = vsyncadd [#allocation4], 4294967264 }
 0x39e   :  { %4098 = vsyncpa [#allocation3], 1 }
 0x39f   :  { %4099 = vsyncpa [#allocation6], 1 }
 0x3a0   :  { %4100 = vsyncpa [#allocation9], 1 }
 0x3a1   :  { %4101 = vsyncpa [#allocation4], 1 }

</bundles_post_ra>
